<compile_context>
chip_gen: v7x
topology: tpu7x:2x2x1
jax: 0.10.0
libtpu: 0.0.40
codegen_flags: <defaults>
</compile_context>

<pallas_src>
import jax
import jax.numpy as jnp
from jax.experimental import pallas as pl
from jax.experimental.pallas import tpu as pltpu

LANE = 128
# Large-negative fill for the padded logit columns of the last layer.  Kept as
# a finite f32 value (NOT -inf) so exp(logit - max) underflows cleanly to 0.
NEG_FILL = -1e30


def _round_up(n, m):
    return ((n + m - 1) // m) * m


def _choose_tb(batch, tb_max):
    """Batch tile: floor ~256 for MXU row-stream amortization, never larger
    than the (padded) batch, and >=2 grid steps when the batch allows."""
    tb = min(tb_max, _round_up(batch, 16))
    half = _round_up(max(batch // 2, 1), 16)
    if half >= 256:                      # keep at least 2 pipelined grid steps
        tb = min(tb, half)
    return max(_round_up(tb, 16), 16)


# ---------------------------------------------------------------------------
# Kernel: one batch tile of the whole 7-layer forward, entirely VMEM resident.
# ---------------------------------------------------------------------------
def _mlp_kernel(x_ref, w1_ref, ws_ref, bs_ref, o_ref):
    b_all = bs_ref[...]                                   # (8, H) f32

    # Layer 1: bf16 x (TB, num_in) @ bf16 w1 (num_in, H) -> f32 acc.
    h = jnp.dot(x_ref[...], w1_ref[...],
                preferred_element_type=jnp.float32) + b_all[0:1, :]
    h = jnp.maximum(h, 0.0).astype(ws_ref.dtype)          # bf16 between layers

    n_rest = ws_ref.shape[0]                              # 6 stacked layers
    y = h
    for li in range(n_rest):                              # unrolled at trace
        y = jnp.dot(h, ws_ref[li],
                    preferred_element_type=jnp.float32) + b_all[li + 1:li + 2, :]
        if li < n_rest - 1:
            h = jnp.maximum(y, 0.0).astype(ws_ref.dtype)

    # Softmax over features; padded columns carry the -1e30 bias -> exp == 0.
    logits = y                                            # (TB, H) f32
    m = jnp.max(logits, axis=-1, keepdims=True)
    e = jnp.exp(logits - m)
    denom = jnp.sum(e, axis=-1, keepdims=True)
    inv = pl.reciprocal(denom, approx=True)   # EUP slot; rows sum to 1 +- ~1e-3
    o_ref[...] = (e * inv).astype(o_ref.dtype)


# ---------------------------------------------------------------------------
# One-time parameter preparation (outside the hot path).
# ---------------------------------------------------------------------------
def prepare_params(params, weight_dtype=jnp.bfloat16):
    """Pad hidden/output dims to a common 128-lane multiple H and stack:
       w1      : (num_in, H)  bf16   (K kept un-padded)
       w_stack : (n-1, H, H)  bf16
       b_stack : (8, H)       f32    (row i = bias of layer i; last layer's
                                      padded columns get -1e30)
    Zero padding keeps the real columns numerically exact (ReLU(0) == 0)."""
    n = len(params)
    num_in = params[0][0].shape[0]
    H = max(_round_up(w.shape[1], LANE) for w, _ in params)
    H = max(H, max(_round_up(w.shape[0], LANE) for w, _ in params[1:]))

    w1_real = params[0][0]
    w1 = jnp.zeros((num_in, H), weight_dtype)
    w1 = w1.at[:, :w1_real.shape[1]].set(w1_real.astype(weight_dtype))

    w_stack = jnp.zeros((n - 1, H, H), weight_dtype)
    for i, (w, _) in enumerate(params[1:]):
        w_stack = w_stack.at[i, :w.shape[0], :w.shape[1]].set(
            w.astype(weight_dtype))

    b_stack = jnp.zeros((_round_up(n, 8), H), jnp.float32)
    for i, (w, b) in enumerate(params):
        d_out = w.shape[1]
        if i == n - 1:
            # Mask padded logits out of the softmax (must stay f32, see above).
            b_stack = b_stack.at[i, :].set(NEG_FILL)
        b_stack = b_stack.at[i, :d_out].set(b.reshape(-1).astype(jnp.float32))

    return dict(w1=w1, w_stack=w_stack, b_stack=b_stack,
                num_in=num_in, hidden=H, num_layers=n)


# ---------------------------------------------------------------------------
# Wrapper.
# ---------------------------------------------------------------------------
def bluenet_all6a(x, prepared, num_out, *, tb=512):
    """Fused forward pass. x: (batch, num_in) -> (batch, num_out) softmax."""
    batch, num_in = x.shape
    assert num_in == prepared["num_in"]
    H = prepared["hidden"]
    w1, ws, bs = prepared["w1"], prepared["w_stack"], prepared["b_stack"]

    tb = _choose_tb(batch, tb)
    pb = _round_up(batch, tb)

    # Cast once to the MXU operand dtype; pad only the batch remainder
    # (no feature-axis padding, no 4x-inflated copy of x).
    xp = x.astype(w1.dtype)
    if pb != batch:
        xp = jnp.pad(xp, ((0, pb - batch), (0, 0)))

    in_specs = [
        pl.BlockSpec((tb, num_in), lambda i: (i, 0)),       # x: batch-tiled
        pl.BlockSpec(w1.shape, lambda i: (0, 0)),            # constant index ->
        pl.BlockSpec(ws.shape, lambda i: (0, 0, 0)),          #   DMA'd once,
        pl.BlockSpec(bs.shape, lambda i: (0, 0)),             #   VMEM resident
    ]
    out_specs = pl.BlockSpec((tb, H), lambda i: (i, 0))       # lane-dense out

    flops = 2 * pb * (int(w1.shape[0]) * int(w1.shape[1])
                      + int(ws.shape[0]) * H * H)
    bytes_accessed = (int(xp.size) * xp.dtype.itemsize
                      + pb * H * 4
                      + int(w1.size) * w1.dtype.itemsize
                      + int(ws.size) * ws.dtype.itemsize
                      + int(bs.size) * bs.dtype.itemsize)
    cost = pl.CostEstimate(flops=flops, transcendentals=pb * H,
                           bytes_accessed=int(bytes_accessed))

    out = pl.pallas_call(
        _mlp_kernel,
        out_shape=jax.ShapeDtypeStruct((pb, H), jnp.float32),
        grid=(pb // tb,),
        in_specs=in_specs,
        out_specs=out_specs,
        compiler_params=pltpu.CompilerParams(
            # Batch tiles are independent; on v7x this lets the two TensorCores
            # split the batch axis.  TODO(synk): verify 2-TC occupancy in xprof
            # and switch to CORE_PARALLEL / core_map if one core sits idle.
            dimension_semantics=("parallel",),
        ),
        cost_estimate=cost,
    )(xp, w1, ws, bs)

    return out[:batch, :num_out]


# ---------------------------------------------------------------------------
# Deterministic synthetic params + plain-JAX reference.
# ---------------------------------------------------------------------------
def init_params(key, num_in, num_out):
    """nn.Linear-shaped params (pre-transposed to (d_in, d_out))."""
    dims = [
        (num_in, num_in * 2),       # l1
        (num_in * 2, num_in * 4),   # l2
        (num_in * 4, num_in * 4),   # l3
        (num_in * 4, num_in * 2),   # l4
        (num_in * 2, num_in),       # l5
        (num_in, num_out * 2),      # l6
        (num_out * 2, num_out),     # l7
    ]
    params = []
    for (d_in, d_out) in dims:
        key, kw, kb = jax.random.split(key, 3)
        scale = 1.0 / jnp.sqrt(jnp.float32(d_in))
        w = jax.random.uniform(kw, (d_in, d_out), jnp.float32, -scale, scale)
        b = jax.random.uniform(kb, (1, d_out), jnp.float32, -scale, scale)
        params.append((w, b))
    return params


def reference_forward(x, params, weight_dtype=jnp.bfloat16):
    """Plain-JAX reference matching the kernel's precision (bf16 matmul
    operands, f32 accumulation)."""
    h = x.astype(jnp.float32)
    for i, (w, b) in enumerate(params):
        y = jnp.dot(h.astype(weight_dtype), w.astype(weight_dtype),
                    preferred_element_type=jnp.float32) + b.reshape(1, -1)
        h = jnp.maximum(y, 0.0) if i < len(params) - 1 else y
    return jax.nn.softmax(h, axis=-1)


if __name__ == "__main__":
    NUM_IN, NUM_OUT, BATCH = 32, 8, 512

    key = jax.random.PRNGKey(0)
    key, kx = jax.random.split(key)
    x = jax.random.normal(kx, (BATCH, NUM_IN), jnp.float32)

    params = init_params(key, NUM_IN, NUM_OUT)
    prepared = prepare_params(params)          # pad/stack/cast once

    out = bluenet_all6a(x, prepared, NUM_OUT)  # adaptive TB (256 here)
    out = jax.block_until_ready(out)

    ref = reference_forward(x, params)
    assert out.shape == (BATCH, NUM_OUT)
    max_err = float(jnp.max(jnp.abs(out - ref)))
    assert jnp.allclose(out, ref, atol=5e-3), max_err
    assert jnp.allclose(jnp.sum(out, axis=-1), 1.0, atol=5e-3)

    print("KERNEL_OK")
</pallas_src>

<mosaic_0001>
module attributes {stable_mosaic.version = 11 : i64} {
  func.func @_mlp_kernel(%arg0: i32, %arg1: memref<256x32xbf16, #tpu.memory_space<vmem>>, %arg2: memref<32x128xbf16, #tpu.memory_space<vmem>>, %arg3: memref<6x128x128xbf16, #tpu.memory_space<vmem>>, %arg4: memref<8x128xf32, #tpu.memory_space<vmem>>, %arg5: memref<256x128xf32, #tpu.memory_space<vmem>>) attributes {dimension_semantics = [#tpu.dimension_semantics<parallel>], iteration_bounds = array<i64: 2>, scalar_prefetch = 0 : i64, scratch_operands = 0 : i64, tpu.core_type = #tpu.core_type<tc>, window_params = [{transform_indices = @transform_0, window_bounds = array<i64: 256, 32>}, {pipeline_mode = #tpu.pipeline_mode<synchronous>, transform_indices = @transform_1, window_bounds = array<i64: 32, 128>}, {pipeline_mode = #tpu.pipeline_mode<synchronous>, transform_indices = @transform_2, window_bounds = array<i64: 6, 128, 128>}, {pipeline_mode = #tpu.pipeline_mode<synchronous>, transform_indices = @transform_3, window_bounds = array<i64: 8, 128>}, {transform_indices = @transform_4, window_bounds = array<i64: 256, 128>}]} {
    %c0 = arith.constant 0 : index
    %c0_0 = arith.constant 0 : index
    %0 = vector.load %arg4[%c0, %c0_0] : memref<8x128xf32, #tpu.memory_space<vmem>>, vector<8x128xf32>
    %c0_1 = arith.constant 0 : index
    %c0_2 = arith.constant 0 : index
    %1 = vector.load %arg1[%c0_1, %c0_2] : memref<256x32xbf16, #tpu.memory_space<vmem>>, vector<256x32xbf16>
    %c0_3 = arith.constant 0 : index
    %c0_4 = arith.constant 0 : index
    %2 = vector.load %arg2[%c0_3, %c0_4] : memref<32x128xbf16, #tpu.memory_space<vmem>>, vector<32x128xbf16>
    %cst = arith.constant dense<0.000000e+00> : vector<256x128xf32>
    %3 = tpu.matmul %1, %2, %cst {dimension_numbers = #tpu.dot_dimension_numbers<[1], [0], [0], [1], [0, 0, 1, 1], [], []>} : vector<256x32xbf16>, vector<32x128xbf16>, vector<256x128xf32> -> vector<256x128xf32>
    %4 = vector.extract_strided_slice %0 {offsets = [0, 0], sizes = [1, 128], strides = [1, 1]} : vector<8x128xf32> to vector<1x128xf32>
    %5 = vector.broadcast %4 : vector<1x128xf32> to vector<256x128xf32>
    %6 = arith.addf %3, %5 : vector<256x128xf32>
    %cst_5 = arith.constant 0.000000e+00 : f32
    %7 = vector.broadcast %cst_5 : f32 to vector<256x128xf32>
    %8 = arith.maximumf %6, %7 : vector<256x128xf32>
    %9 = arith.truncf %8 : vector<256x128xf32> to vector<256x128xbf16>
    %c0_6 = arith.constant 0 : index
    %c0_7 = arith.constant 0 : index
    %c0_8 = arith.constant 0 : index
    %10 = vector.load %arg3[%c0_6, %c0_7, %c0_8] : memref<6x128x128xbf16, #tpu.memory_space<vmem>>, vector<1x128x128xbf16>
    %11 = vector.shape_cast %10 : vector<1x128x128xbf16> to vector<128x128xbf16>
    %cst_9 = arith.constant dense<0.000000e+00> : vector<256x128xf32>
    %12 = tpu.matmul %9, %11, %cst_9 {dimension_numbers = #tpu.dot_dimension_numbers<[1], [0], [0], [1], [0, 0, 1, 1], [], []>} : vector<256x128xbf16>, vector<128x128xbf16>, vector<256x128xf32> -> vector<256x128xf32>
    %13 = vector.extract_strided_slice %0 {offsets = [1, 0], sizes = [1, 128], strides = [1, 1]} : vector<8x128xf32> to vector<1x128xf32>
    %14 = vector.broadcast %13 : vector<1x128xf32> to vector<256x128xf32>
    %15 = arith.addf %12, %14 : vector<256x128xf32>
    %cst_10 = arith.constant 0.000000e+00 : f32
    %16 = vector.broadcast %cst_10 : f32 to vector<256x128xf32>
    %17 = arith.maximumf %15, %16 : vector<256x128xf32>
    %18 = arith.truncf %17 : vector<256x128xf32> to vector<256x128xbf16>
    %c1 = arith.constant 1 : index
    %c0_11 = arith.constant 0 : index
    %c0_12 = arith.constant 0 : index
    %19 = vector.load %arg3[%c1, %c0_11, %c0_12] : memref<6x128x128xbf16, #tpu.memory_space<vmem>>, vector<1x128x128xbf16>
    %20 = vector.shape_cast %19 : vector<1x128x128xbf16> to vector<128x128xbf16>
    %cst_13 = arith.constant dense<0.000000e+00> : vector<256x128xf32>
    %21 = tpu.matmul %18, %20, %cst_13 {dimension_numbers = #tpu.dot_dimension_numbers<[1], [0], [0], [1], [0, 0, 1, 1], [], []>} : vector<256x128xbf16>, vector<128x128xbf16>, vector<256x128xf32> -> vector<256x128xf32>
    %22 = vector.extract_strided_slice %0 {offsets = [2, 0], sizes = [1, 128], strides = [1, 1]} : vector<8x128xf32> to vector<1x128xf32>
    %23 = vector.broadcast %22 : vector<1x128xf32> to vector<256x128xf32>
    %24 = arith.addf %21, %23 : vector<256x128xf32>
    %cst_14 = arith.constant 0.000000e+00 : f32
    %25 = vector.broadcast %cst_14 : f32 to vector<256x128xf32>
    %26 = arith.maximumf %24, %25 : vector<256x128xf32>
    %27 = arith.truncf %26 : vector<256x128xf32> to vector<256x128xbf16>
    %c2 = arith.constant 2 : index
    %c0_15 = arith.constant 0 : index
    %c0_16 = arith.constant 0 : index
    %28 = vector.load %arg3[%c2, %c0_15, %c0_16] : memref<6x128x128xbf16, #tpu.memory_space<vmem>>, vector<1x128x128xbf16>
    %29 = vector.shape_cast %28 : vector<1x128x128xbf16> to vector<128x128xbf16>
    %cst_17 = arith.constant dense<0.000000e+00> : vector<256x128xf32>
    %30 = tpu.matmul %27, %29, %cst_17 {dimension_numbers = #tpu.dot_dimension_numbers<[1], [0], [0], [1], [0, 0, 1, 1], [], []>} : vector<256x128xbf16>, vector<128x128xbf16>, vector<256x128xf32> -> vector<256x128xf32>
    %31 = vector.extract_strided_slice %0 {offsets = [3, 0], sizes = [1, 128], strides = [1, 1]} : vector<8x128xf32> to vector<1x128xf32>
    %32 = vector.broadcast %31 : vector<1x128xf32> to vector<256x128xf32>
    %33 = arith.addf %30, %32 : vector<256x128xf32>
    %cst_18 = arith.constant 0.000000e+00 : f32
    %34 = vector.broadcast %cst_18 : f32 to vector<256x128xf32>
    %35 = arith.maximumf %33, %34 : vector<256x128xf32>
    %36 = arith.truncf %35 : vector<256x128xf32> to vector<256x128xbf16>
    %c3 = arith.constant 3 : index
    %c0_19 = arith.constant 0 : index
    %c0_20 = arith.constant 0 : index
    %37 = vector.load %arg3[%c3, %c0_19, %c0_20] : memref<6x128x128xbf16, #tpu.memory_space<vmem>>, vector<1x128x128xbf16>
    %38 = vector.shape_cast %37 : vector<1x128x128xbf16> to vector<128x128xbf16>
    %cst_21 = arith.constant dense<0.000000e+00> : vector<256x128xf32>
    %39 = tpu.matmul %36, %38, %cst_21 {dimension_numbers = #tpu.dot_dimension_numbers<[1], [0], [0], [1], [0, 0, 1, 1], [], []>} : vector<256x128xbf16>, vector<128x128xbf16>, vector<256x128xf32> -> vector<256x128xf32>
    %40 = vector.extract_strided_slice %0 {offsets = [4, 0], sizes = [1, 128], strides = [1, 1]} : vector<8x128xf32> to vector<1x128xf32>
    %41 = vector.broadcast %40 : vector<1x128xf32> to vector<256x128xf32>
    %42 = arith.addf %39, %41 : vector<256x128xf32>
    %cst_22 = arith.constant 0.000000e+00 : f32
    %43 = vector.broadcast %cst_22 : f32 to vector<256x128xf32>
    %44 = arith.maximumf %42, %43 : vector<256x128xf32>
    %45 = arith.truncf %44 : vector<256x128xf32> to vector<256x128xbf16>
    %c4 = arith.constant 4 : index
    %c0_23 = arith.constant 0 : index
    %c0_24 = arith.constant 0 : index
    %46 = vector.load %arg3[%c4, %c0_23, %c0_24] : memref<6x128x128xbf16, #tpu.memory_space<vmem>>, vector<1x128x128xbf16>
    %47 = vector.shape_cast %46 : vector<1x128x128xbf16> to vector<128x128xbf16>
    %cst_25 = arith.constant dense<0.000000e+00> : vector<256x128xf32>
    %48 = tpu.matmul %45, %47, %cst_25 {dimension_numbers = #tpu.dot_dimension_numbers<[1], [0], [0], [1], [0, 0, 1, 1], [], []>} : vector<256x128xbf16>, vector<128x128xbf16>, vector<256x128xf32> -> vector<256x128xf32>
    %49 = vector.extract_strided_slice %0 {offsets = [5, 0], sizes = [1, 128], strides = [1, 1]} : vector<8x128xf32> to vector<1x128xf32>
    %50 = vector.broadcast %49 : vector<1x128xf32> to vector<256x128xf32>
    %51 = arith.addf %48, %50 : vector<256x128xf32>
    %cst_26 = arith.constant 0.000000e+00 : f32
    %52 = vector.broadcast %cst_26 : f32 to vector<256x128xf32>
    %53 = arith.maximumf %51, %52 : vector<256x128xf32>
    %54 = arith.truncf %53 : vector<256x128xf32> to vector<256x128xbf16>
    %c5 = arith.constant 5 : index
    %c0_27 = arith.constant 0 : index
    %c0_28 = arith.constant 0 : index
    %55 = vector.load %arg3[%c5, %c0_27, %c0_28] : memref<6x128x128xbf16, #tpu.memory_space<vmem>>, vector<1x128x128xbf16>
    %56 = vector.shape_cast %55 : vector<1x128x128xbf16> to vector<128x128xbf16>
    %cst_29 = arith.constant dense<0.000000e+00> : vector<256x128xf32>
    %57 = tpu.matmul %54, %56, %cst_29 {dimension_numbers = #tpu.dot_dimension_numbers<[1], [0], [0], [1], [0, 0, 1, 1], [], []>} : vector<256x128xbf16>, vector<128x128xbf16>, vector<256x128xf32> -> vector<256x128xf32>
    %58 = vector.extract_strided_slice %0 {offsets = [6, 0], sizes = [1, 128], strides = [1, 1]} : vector<8x128xf32> to vector<1x128xf32>
    %59 = vector.broadcast %58 : vector<1x128xf32> to vector<256x128xf32>
    %60 = arith.addf %57, %59 : vector<256x128xf32>
    %cst_30 = arith.constant dense<0xFF800000> : vector<256xf32>
    %61 = vector.multi_reduction <maximumf>, %60, %cst_30 [1] : vector<256x128xf32> to vector<256xf32>
    %62 = vector.shape_cast %61 : vector<256xf32> to vector<256x1xf32>
    %63 = vector.broadcast %62 : vector<256x1xf32> to vector<256x128xf32>
    %64 = arith.subf %60, %63 : vector<256x128xf32>
    %65 = math.exp %64 : vector<256x128xf32>
    %cst_31 = arith.constant dense<0.000000e+00> : vector<256xf32>
    %66 = vector.multi_reduction <add>, %65, %cst_31 [1] : vector<256x128xf32> to vector<256xf32>
    %67 = vector.shape_cast %66 : vector<256xf32> to vector<256x1xf32>
    %68 = tpu.reciprocal %67 {approx = true} : vector<256x1xf32> -> vector<256x1xf32>
    %69 = vector.broadcast %68 : vector<256x1xf32> to vector<256x128xf32>
    %70 = arith.mulf %65, %69 : vector<256x128xf32>
    %c0_32 = arith.constant 0 : index
    %c0_33 = arith.constant 0 : index
    %71 = vector.load %arg5[%c0_32, %c0_33] : memref<256x128xf32, #tpu.memory_space<vmem>>, vector<256x128xf32>
    tpu.vector_store %arg5[%c0_32, %c0_33], %70 {strides = array<i32>} : memref<256x128xf32, #tpu.memory_space<vmem>>, vector<256x128xf32>,
    return
  }
  func.func @transform_0(%arg0: i32) -> (i32, i32) {
    %c0_i32 = arith.constant 0 : i32
    %c0_i32_0 = arith.constant 0 : i32
    return %arg0, %c0_i32 : i32, i32
  }
  func.func @transform_1(%arg0: i32) -> (i32, i32) {
    %c0_i32 = arith.constant 0 : i32
    %c0_i32_0 = arith.constant 0 : i32
    %c0_i32_1 = arith.constant 0 : i32
    return %c0_i32, %c0_i32_0 : i32, i32
  }
  func.func @transform_2(%arg0: i32) -> (i32, i32, i32) {
    %c0_i32 = arith.constant 0 : i32
    %c0_i32_0 = arith.constant 0 : i32
    %c0_i32_1 = arith.constant 0 : i32
    %c0_i32_2 = arith.constant 0 : i32
    return %c0_i32, %c0_i32_0, %c0_i32_1 : i32, i32, i32
  }
  func.func @transform_3(%arg0: i32) -> (i32, i32) {
    %c0_i32 = arith.constant 0 : i32
    %c0_i32_0 = arith.constant 0 : i32
    %c0_i32_1 = arith.constant 0 : i32
    return %c0_i32, %c0_i32_0 : i32, i32
  }
  func.func @transform_4(%arg0: i32) -> (i32, i32) {
    %c0_i32 = arith.constant 0 : i32
    %c0_i32_0 = arith.constant 0 : i32
    return %arg0, %c0_i32 : i32, i32
  }
}

</mosaic_0001>

<bundles_post_ra>
// kernel: tpu_custom_call.1
= control target key start
LH: loop header
LB: loop body
LE: loop exit
PB: predicated region body
PF: predicated region fallthrough
CT: control target
= control target key end

     0   :  { %9 = vsyncpa [#allocation3], 0  ;;  %s4338_s0 = inlined_call_operand.vmem [shape: bf16[512,32], index: 0, kind: input, shape index: {}]   ;;  %s4339_s1 = inlined_call_operand.vmem [shape: bf16[32,128], index: 1, kind: input, shape index: {}]   ;;  %s4340_s2 = inlined_call_operand.hbm [shape: bf16[6,128,128], index: 2, kind: input, shape index: {}]   ;;  %s4341_s3 = inlined_call_operand.vmem [shape: f32[8,128], index: 3, kind: input, shape index: {}]   ;;  %s4342_s4 = inlined_call_operand.hbm [shape: f32[512,128], index: 4, kind: output, shape index: {}]  }
   0x1   :  { %10 = vsyncpa [#allocation4], 0 }
   0x2   :  { %12 = vsyncpa [#allocation4 + $0x1], 0  ;;  %s3596_s15 = smov 0   ;;  %s3598_s16 = smov 0  }
   0x3   :  { %s3600_s17 = smov 0   ;;  %s3602_s18 = smov 0  }
   0x4 LB: > { %s3617_s19 = sadd.s32 4294967295, %s3563_s18   ;;  %s2633_s20 = sadd.s32 4294967294, %s3563_s18   ;;  %s3563_s18 = sphi %s3602_s18, %s4358_s18   ;;  %s3559_s17 = sphi %s3600_s17, %s4357_s17   ;;  %s3555_s16 = sphi %s3598_s16, %s4356_s16   ;;  %s3551_s15 = sphi %s3596_s15, %s4355_s15  }
   0x5   : > { %s3621_s21 = sadd.s32 1, %s3563_s18   ;;  %s114_s22 = sadd.s32 1, %s3559_s17 }
   0x6   : > { %s111_s23 = ssub.s32 %s3563_s18, %s3621_s21  ;;  %p124_p0 = scmp.ne.s32.totalorder %s3559_s17, %s3555_s16 }
   0x7   : > { %p112_p1 = scmp.eq.s32.totalorder %s111_s23, 0  ;;  %p125_p2 = scmp.eq.s32.totalorder %s3617_s19, 1 }
   0x8   : > { %p130_p3 = scmp.ne.s32.totalorder %s3555_s16, %s3551_s15  ;;  %p131_p4 = scmp.eq.s32.totalorder %s2633_s20, 1 }
   0x9   : > { %s3632_s24 = scalar_select %p112_p1, %s3559_s17, %s114_s22  }
   0xa   : > { %p3634_p5 = por %p125_p2, %p124_p0  ;;  %p3638_p6 = por %p131_p4, %p130_p3 }
   0xb   : > { %p2634_p7 = scmp.ge.s32.totalorder %s3563_s18, 1  ;;  %p138_p8 = scmp.lt.s32.totalorder %s3563_s18, 3 }
   0xc   : > { %s4346_s25 = scalar_select %p3634_p5, 1, 0 }
   0xd   : > { %s4347_s26 = scalar_select %p3638_p6, 1, 0 }
   0xe   : > { %p4343_p9 = scmp.eq.s32.totalorder %s3617_s19, 0  ;;  %p3645_p10 = pnand %p2634_p7, %p138_p8 }
   0xf   : > { %s3565_s28 = smov [#allocation2]   ;;  %s3469_s7 = scalar_lea.hbm %s4340_s2, 6144 }
  0x10   : > { %s4348_s27 = scalar_select %p3645_p10, 1, 0 }
  0x11   : > { %s153_s29 = sshll.u32 %s3565_s28, 4  ;;  %p3226_p11 = pneg %p3645_p10  ;;  %s154_s29 = int_to_ptr.vmem [resolvable:$true] %s153_s29 }
  0x12   : > { %p3470_p13 = scmp.ne.s32.totalorder %s4340_s2, %s3469_s7  ;;  %p3476_p3 = scmp.lt.u32.totalorder %s3469_s7, %s4340_s2 }
  0x13   : > { %p3653_p12 = pnand %p4343_p9, %p3226_p11 }
  0x15   : > { %p3471_p0 = pneg %p3653_p12 }
  0x17   : > { %p3472_p1 = pnand %p3471_p0, %p3470_p13 }
  0x19   : > { %p3473_p2 = pneg %p3472_p1 }
  0x1b   : > { %p3478_p4 = pnand %p3476_p3, %p3473_p2 }
  0x1d   : > { %3481 = shalt.err (!%p3478_p4)
}
  0x1e   : > { %s3482_s12 = scalar_lea.vmem %s154_s29, 6144  ;;  %p3490_p9 = scmp.lt.s32.totalorder %s154_s29, %s154_s29 }
  0x1f   : > { %p3483_p7 = scmp.ne.s32.totalorder %s154_s29, %s3482_s12  ;;  %p3491_p6 = scmp.lt.s32.totalorder %s3482_s12, %s3482_s12 }
  0x21   : > { %p3485_p8 = pnand %p3483_p7, %p3471_p0  ;;  %p3492_p5 = por %p3491_p6, %p3490_p9 }
  0x23   : > { %p3486_p11 = pneg %p3485_p8 }
  0x25   : > { %p3493_p10 = pnand %p3492_p5, %p3486_p11 }
  0x27   : > { %3496 = shalt.err (!%p3493_p10)
}
  0x28   : > { %s3566_s13 = smov 64   ;;  %s3567_s14 = smov 4  }
  0x29   : > { %3229 = dma.hbm_to_vmem [thread:$0]  (!%p3653_p12), %s4340_s2, 6144, %s154_s29, [#allocation3], %s3566_s13, %s3566_s13, %s3567_s14  }
  0x2a   : > { %p4350_p13 = scmp.ne.s32.totalorder %s4348_s27, 0 }
  0x2b   : > { %p4351_p1 = scmp.eq.s32.totalorder (!%p4350_p13), %s3617_s19, 0 }
  0x2c   : > { %181 = sbr.rel (%p4350_p13) target bundleno = 1998 (0x7ce), region = 36 }
  0x33   : > { %3542 = dma.done.wait (%p4351_p1), [#allocation3], 6144   ;;  %p4352_p0 = pmov %p4351_p1 }
  0x34   : > { %s2640_s23 = sshll.u32 %s3617_s19, 5  ;;  %v3274_v0 = vld [vmem:[%s4339_s1] sm:$0xff]   ;;  %v3275_v1 = vld [vmem:[%s4339_s1 + $0x8] sm:$0xff]   ;;  %vm348_vm0 = vcmask 261120   ;;  %v3294_v17 = vld [vmem:[#allocation2 + $0x10] sm:$0xff]   ;;  %v252_v32 = vlaneseq  ;;  %s204_s13 = sand.u32 1, %s3555_s16  }
  0x35   : > { %3544 = vsyncadd (%p4352_p0), [#allocation3], 4294961152  ;;  %p208_p5 = scmp.lt.s32.totalorder %s2640_s23, 63  ;;  %2892 = vmatprep.subr.bf16.mxu0 %v3274_v0  ;;  %3216 = vmatprep.subr.bf16.mxu1 %v3274_v0  ;;  %v3292_v12 = vld [vmem:[#allocation2] sm:$0xff]   ;;  %v3293_v13 = vld [vmem:[#allocation2 + $0x8] sm:$0xff]   ;;  %s2639_s14 = sshll.u32 %s204_s13, 8 }
  0x36   : > { %2893 = vmatpush3.bf16.msra.mxu0 %v3274_v0  ;;  %3218 = vmatpush3.bf16.msra.mxu1 %v3274_v0  ;;  %v3295_v19 = vld [vmem:[#allocation2 + $0x18] sm:$0xff]   ;;  %v3296_v21 = vld [vmem:[#allocation2 + $0x20] sm:$0xff]   ;;  %v3297_v23 = vld [vmem:[#allocation2 + $0x28] sm:$0xff]   ;;  %v3723_v33 = vshrl.u32 %v252_v32, 7  ;;  %s4221_s20 = scalar_lea.vmem [#allocation5], %s2639_s14  ;;  %s2729_s22 = sshll.u32 %s3617_s19, 12 }
  0x37   : > { %s4360_s23 = smov (!%p208_p5, %s2640_s23), 63  ;;  %2894 = vmatprep.subr.bf16.mxu0 %v3275_v1  ;;  %3217 = vmatprep.subr.bf16.mxu1 %v3275_v1  ;;  %v3298_v24 = vld [vmem:[#allocation2 + $0x30] sm:$0xff]   ;;  %v3299_v25 = vld [vmem:[#allocation2 + $0x38] sm:$0xff]   ;;  %v3300_v26 = vld [vmem:[#allocation2 + $0x40] sm:$0xff]   ;;  %s4289_s30 = scalar_lea.hbm %s4342_s4, %s2729_s22 }
  0x38   : > { %s2641_s28 = sshll.u32 %s4360_s23, 2  ;;  %v3301_v27 = vld [vmem:[#allocation2 + $0x48] sm:$0xff]   ;;  %v3302_v28 = vld [vmem:[#allocation2 + $0x50] sm:$0xff]   ;;  %v3303_v29 = vld [vmem:[#allocation2 + $0x58] sm:$0xff]   ;;  %v254_v34 = vsub.s32 0, %v3723_v33  ;;  %s2559_s23 = sshll.u32 %s4221_s20, 4  ;;  %s4291_s23 = int_to_ptr.vmem [resolvable:$true] %s2559_s23 }
  0x39   : > { %s3683_s6 = scalar_lea.vmem %s4338_s0, %s2641_s28  ;;  %v3304_v30 = vld [vmem:[#allocation2 + $0x60] sm:$0xff]   ;;  %v3305_v31 = vld [vmem:[#allocation2 + $0x68] sm:$0xff]   ;;  %s4297_s19 = scalar_lea.sflag [#allocation4], %s204_s13 }
  0x3a   : > { %v3276_v2 = vld [vmem:[%s3683_s6] sm:$0xff]   ;;  %v3277_v3 = vld [vmem:[%s3683_s6 + $0x8] sm:$0xff]   ;;  %2895 = vmatpush3.bf16.msra.mxu0 %v3275_v1  ;;  %v3278_v4 = vld [vmem:[%s3683_s6 + $0x10] sm:$0xff]   ;;  %3219 = vmatpush3.bf16.msra.mxu1 %v3275_v1  ;;  %p4353_p9 = scmp.ne.s32.totalorder %s4346_s25, 0  ;;  %s3568_s29 = smov [#allocation5]  }
  0x3b   : > { %2896 = vmatprep.mubr.msk.bf16.mxu0 %vm348_vm0, %v3276_v2  ;;  %v3284_v5 = vld [vmem:[%s3683_s6 + $0x40] sm:$0xff]   ;;  %v3285_v6 = vld [vmem:[%s3683_s6 + $0x48] sm:$0xff]   ;;  %v3286_v7 = vld [vmem:[%s3683_s6 + $0x50] sm:$0xff]   ;;  %2928 = vmatprep.subr.bf16.mxu1 %v3292_v12  ;;  %s3501_s7 = sshll.u32 %s3568_s29, 4  ;;  %s3502_s7 = int_to_ptr.vmem [resolvable:$false] %s3501_s7 }
  0x3c   : > { %2912 = vmatprep.mubr.msk.bf16.mxu1 %vm348_vm0, %v3284_v5  ;;  %v3279_v8 = vld [vmem:[%s3683_s6 + $0x18] sm:$0xff]   ;;  %v3280_v9 = vld [vmem:[%s3683_s6 + $0x20] sm:$0xff]   ;;  %v3281_v14 = vld [vmem:[%s3683_s6 + $0x28] sm:$0xff]   ;;  %2976 = vmatprep.subr.bf16.mxu0 %v3300_v26  ;;  %s3503_s27 = scalar_lea.vmem %s3502_s7, 8192  ;;  %p3504_p2 = scmp.lt.s32.totalorder %s4291_s23, %s3502_s7 }
  0x3d   : > { %2897 = vmatmul.mubr.msk.bf16.vlgmr.msra.gmra.mrb[0].mxu0 %vm348_vm0, %v3277_v3  ;;  %2913 = vmatmul.mubr.msk.bf16.vlgmr.msra.gmra.mrb[0].mxu1 %vm348_vm0, %v3285_v6  ;;  %v3287_v10 = vld [vmem:[%s3683_s6 + $0x58] sm:$0xff]   ;;  %v3288_v11 = vld [vmem:[%s3683_s6 + $0x60] sm:$0xff]   ;;  %v3282_v15 = vld [vmem:[%s3683_s6 + $0x30] sm:$0xff]  }
  0x3e   : > { %2900 = vmatprep.mubr.msk.bf16.mxu0 %vm348_vm0, %v3278_v4  ;;  %2916 = vmatprep.mubr.msk.bf16.mxu1 %vm348_vm0, %v3286_v7  ;;  %v3289_v16 = vld [vmem:[%s3683_s6 + $0x68] sm:$0xff]   ;;  %v3290_v18 = vld [vmem:[%s3683_s6 + $0x70] sm:$0xff]   ;;  %v3283_v20 = vld [vmem:[%s3683_s6 + $0x38] sm:$0xff]  }
  0x3f   : > { %2929 = vmatpush3.bf16.msra.mxu1 %v3292_v12  ;;  %v3291_v22 = vld [vmem:[%s3683_s6 + $0x78] sm:$0xff]   ;;  %2977 = vmatpush3.bf16.msra.mxu0 %v3300_v26  ;;  %v3729_v35 = vld [vmem:[%s4341_s3] sm:$0xff]  ;;  %s3497_s6 = scalar_lea.vmem %s4291_s23, 4096 }
  0x40   : > { %2930 = vmatprep.subr.bf16.mxu1 %v3293_v13  ;;  %2978 = vmatprep.subr.bf16.mxu0 %v3301_v27  ;;  %v3732_v36 = vrot.slane %v3729_v35, %v254_v34  ;;  %p3498_p6 = scmp.ne.s32.totalorder %s4291_s23, %s3497_s6  ;;  %p3505_p3 = scmp.lt.s32.totalorder %s3503_s27, %s3497_s6 }
  0x42   : > { %p3499_p10 = pnand %p3498_p6, %p4353_p9  ;;  %p3506_p4 = por %p3505_p3, %p3504_p2 }
  0x43   : > { %2931 = vmatpush3.bf16.msra.mxu1 %v3293_v13  ;;  %2979 = vmatpush3.bf16.msra.mxu0 %v3301_v27 }
  0x44   : > { %2932 = vmatprep.subr.bf16.mxu1 %v3294_v17  ;;  %2980 = vmatprep.subr.bf16.mxu0 %v3302_v28  ;;  %p3500_p12 = pneg %p3499_p10 }
  0x45   : > { %2901 = vmatmul.mubr.msk.bf16.gmra.mrb[4].mxu0 %vm348_vm0, %v3279_v8  ;;  %2917 = vmatmul.mubr.msk.bf16.gmra.mrb[4].mxu1 %vm348_vm0, %v3287_v10 }
  0x46   : > { %2904 = vmatprep.mubr.msk.bf16.mxu0 %vm348_vm0, %v3280_v9  ;;  %2920 = vmatprep.mubr.msk.bf16.mxu1 %vm348_vm0, %v3288_v11  ;;  %p3507_p7 = pnand %p3506_p4, %p3500_p12 }
  0x47   : > { %2933 = vmatpush3.bf16.msra.mxu1 %v3294_v17  ;;  %2981 = vmatpush3.bf16.msra.mxu0 %v3302_v28 }
  0x48   : > { %2934 = vmatprep.subr.bf16.mxu1 %v3295_v19  ;;  %2982 = vmatprep.subr.bf16.mxu0 %v3303_v29 }
  0x4b   : > { %2935 = vmatpush3.bf16.msra.mxu1 %v3295_v19  ;;  %2983 = vmatpush3.bf16.msra.mxu0 %v3303_v29 }
  0x4c   : > { %2936 = vmatprep.subr.bf16.mxu1 %v3296_v21  ;;  %2984 = vmatprep.subr.bf16.mxu0 %v3304_v30 }
  0x4d   : > { %2905 = vmatmul.mubr.msk.bf16.gmra.mrb[8].mxu0 %vm348_vm0, %v3281_v14  ;;  %2921 = vmatmul.mubr.msk.bf16.gmra.mrb[8].mxu1 %vm348_vm0, %v3289_v16 }
  0x4e   : > { %2908 = vmatprep.mubr.msk.bf16.mxu0 %vm348_vm0, %v3282_v15  ;;  %2924 = vmatprep.mubr.msk.bf16.mxu1 %vm348_vm0, %v3290_v18 }
  0x4f   : > { %2937 = vmatpush3.bf16.msra.mxu1 %v3296_v21  ;;  %2985 = vmatpush3.bf16.msra.mxu0 %v3304_v30 }
  0x50   : > { %2938 = vmatprep.subr.bf16.mxu1 %v3297_v23  ;;  %2986 = vmatprep.subr.bf16.mxu0 %v3305_v31 }
  0x53   : > { %2939 = vmatpush3.bf16.msra.mxu1 %v3297_v23  ;;  %2987 = vmatpush3.bf16.msra.mxu0 %v3305_v31 }
  0x54   : > { %2940 = vmatprep.subr.bf16.mxu1 %v3298_v24 }
  0x55   : > { %2909 = vmatmul.mubr.msk.bf16.gmra.mrb[12].mxu0 %vm348_vm0, %v3283_v20  ;;  %2925 = vmatmul.mubr.msk.bf16.gmra.mrb[12].mxu1 %vm348_vm0, %v3291_v22 }
  0x57   : > { %2941 = vmatpush3.bf16.msra.mxu1 %v3298_v24 }
  0x58   : > { %2942 = vmatprep.subr.bf16.mxu1 %v3299_v25 }
  0x5b   : > { %2943 = vmatpush3.bf16.msra.mxu1 %v3299_v25 }
 0x110   : > { %v2898_v37 = vpop.f32.mrb[0].mxu0  ;;  %v2914_v44 = vpop.f32.mrb[0].mxu1 }
 0x111   : > { %v440_v38 = vadd.f32 %v2898_v37, %v3732_v36  ;;  %v431_v39 = vpop.f32.mrb[1].mxu0  ;;  %v504_v46 = vadd.f32 %v2914_v44, %v3732_v36  ;;  %v495_v47 = vpop.f32.mrb[1].mxu1 }
 0x112   : > { %v432_v40 = vadd.f32 %v431_v39, %v3732_v36  ;;  %v2899_v41 = vpop.f32.mrb[2].mxu0  ;;  %v496_v50 = vadd.f32 %v495_v47, %v3732_v36  ;;  %v2915_v51 = vpop.f32.mrb[2].mxu1 }
 0x113   : > { %v443_v42 = vadd.f32 %v2899_v41, %v3732_v36  ;;  %v434_v43 = vpop.f32.mrb[3].mxu0  ;;  %v560_v48 = vmax.f32 %v440_v38, 0.0  ;;  %v576_v54 = vmax.f32 %v504_v46, 0.0  ;;  %v507_v55 = vadd.f32 %v2915_v51, %v3732_v36  ;;  %v498_v56 = vpop.f32.mrb[3].mxu1 }
 0x114   : > { %v435_v45 = vadd.f32 %v434_v43, %v3732_v36  ;;  %v558_v52 = vmax.f32 %v432_v40, 0.0  ;;  %v574_v58 = vmax.f32 %v496_v50, 0.0  ;;  %v499_v59 = vadd.f32 %v498_v56, %v3732_v36 }
 0x115   : > { %v561_v49 = vmax.f32 %v443_v42, 0.0  ;;  %v577_v62 = vmax.f32 %v507_v55, 0.0 }
 0x116   : > { %v559_v53 = vmax.f32 %v435_v45, 0.0  ;;  %v575_v1 = vmax.f32 %v499_v59, 0.0 }
 0x117   : > { %v591_v57 = vpack.c.bf16 %v561_v49, %v560_v48  ;;  %v3744_v4 = vpack.c.bf16 %v577_v62, %v576_v54 }
 0x118   : > { %v590_v60 = vpack.c.bf16 %v559_v53, %v558_v52  ;;  %v2902_v61 = vpop.f32.mrb[4].mxu0  ;;  %v3747_v8 = vpack.c.bf16 %v575_v1, %v574_v58  ;;  %v2918_v9 = vpop.f32.mrb[4].mxu1 }
 0x119   : > { %v456_v63 = vadd.f32 %v2902_v61, %v3732_v36  ;;  %v447_v0 = vpop.f32.mrb[5].mxu0  ;;  %v520_v11 = vadd.f32 %v2918_v9, %v3732_v36  ;;  %v511_v12 = vpop.f32.mrb[5].mxu1 }
 0x11a   : > { %v448_v2 = vadd.f32 %v447_v0, %v3732_v36  ;;  %v2903_v3 = vpop.f32.mrb[6].mxu0  ;;  %2944 = vmatprep.mubr.bf16.mxu1 %v590_v60  ;;  %v512_v14 = vadd.f32 %v511_v12, %v3732_v36  ;;  %v2919_v15 = vpop.f32.mrb[6].mxu1 }
 0x11b   : > { %v564_v5 = vmax.f32 %v456_v63, 0.0  ;;  %v459_v6 = vadd.f32 %v2903_v3, %v3732_v36  ;;  %v450_v7 = vpop.f32.mrb[7].mxu0  ;;  %2945 = vmatmul.mubr.bf16.vlgmr.msra.gmra.mrb[16].mxu1 %v591_v57  ;;  %v580_v18 = vmax.f32 %v520_v11, 0.0  ;;  %v523_v19 = vadd.f32 %v2919_v15, %v3732_v36  ;;  %v514_v20 = vpop.f32.mrb[7].mxu1 }
 0x11c   : > { %v451_v10 = vadd.f32 %v450_v7, %v3732_v36  ;;  %v562_v16 = vmax.f32 %v448_v2, 0.0  ;;  %v578_v22 = vmax.f32 %v512_v14, 0.0  ;;  %v515_v23 = vadd.f32 %v514_v20, %v3732_v36 }
 0x11d   : > { %v565_v13 = vmax.f32 %v459_v6, 0.0  ;;  %v581_v26 = vmax.f32 %v523_v19, 0.0 }
 0x11e   : > { %v563_v17 = vmax.f32 %v451_v10, 0.0  ;;  %v579_v29 = vmax.f32 %v515_v23, 0.0 }
 0x11f   : > { %v593_v21 = vpack.c.bf16 %v565_v13, %v564_v5  ;;  %v601_v32 = vpack.c.bf16 %v581_v26, %v580_v18  ;;  %v3306_v26 = vld [vmem:[#allocation2 + $0x70] sm:$0xff]  }
 0x120   : > { %v592_v24 = vpack.c.bf16 %v563_v17, %v562_v16  ;;  %v2906_v25 = vpop.f32.mrb[8].mxu0  ;;  %v600_v39 = vpack.c.bf16 %v579_v29, %v578_v22  ;;  %v2922_v40 = vpop.f32.mrb[8].mxu1  ;;  %2988 = vmatprep.subr.bf16.mxu0 %v3306_v26  ;;  %v3312_v29 = vld [vmem:[#allocation2 + $0xa0] sm:$0xff]  }
 0x121   : > { %v472_v27 = vadd.f32 %v2906_v25, %v3732_v36  ;;  %v463_v28 = vpop.f32.mrb[9].mxu0  ;;  %v536_v42 = vadd.f32 %v2922_v40, %v3732_v36  ;;  %v527_v43 = vpop.f32.mrb[9].mxu1  ;;  %2989 = vmatpush3.bf16.msra.mxu0 %v3306_v26 }
 0x122   : > { %v464_v30 = vadd.f32 %v463_v28, %v3732_v36  ;;  %v2907_v31 = vpop.f32.mrb[10].mxu0  ;;  %2948 = vmatprep.mubr.bf16.mxu1 %v592_v24  ;;  %v528_v45 = vadd.f32 %v527_v43, %v3732_v36  ;;  %v2923_v46 = vpop.f32.mrb[10].mxu1  ;;  %v3309_v28 = vld [vmem:[#allocation2 + $0x88] sm:$0xff]  }
 0x123   : > { %v568_v34 = vmax.f32 %v472_v27, 0.0  ;;  %v475_v37 = vadd.f32 %v2907_v31, %v3732_v36  ;;  %v466_v38 = vpop.f32.mrb[11].mxu0  ;;  %2949 = vmatmul.mubr.bf16.gmra.mrb[20].mxu1 %v593_v21  ;;  %v584_v49 = vmax.f32 %v536_v42, 0.0  ;;  %v539_v50 = vadd.f32 %v2923_v46, %v3732_v36  ;;  %v530_v51 = vpop.f32.mrb[11].mxu1  ;;  %v3308_v27 = vld [vmem:[#allocation2 + $0x80] sm:$0xff]   ;;  %v3314_v31 = vld [vmem:[#allocation2 + $0xb0] sm:$0xff]  }
 0x124   : > { %v467_v41 = vadd.f32 %v466_v38, %v3732_v36  ;;  %v566_v47 = vmax.f32 %v464_v30, 0.0  ;;  %v582_v53 = vmax.f32 %v528_v45, 0.0  ;;  %v531_v54 = vadd.f32 %v530_v51, %v3732_v36  ;;  %3024 = vmatprep.subr.bf16.mxu1 %v3308_v27  ;;  %v3313_v30 = vld [vmem:[#allocation2 + $0xa8] sm:$0xff]  }
 0x125   : > { %v569_v44 = vmax.f32 %v475_v37, 0.0  ;;  %v585_v57 = vmax.f32 %v539_v50, 0.0  ;;  %3025 = vmatpush3.bf16.msra.mxu1 %v3308_v27 }
 0x126   : > { %v567_v48 = vmax.f32 %v467_v41, 0.0  ;;  %v583_v60 = vmax.f32 %v531_v54, 0.0  ;;  %3026 = vmatprep.subr.bf16.mxu1 %v3309_v28 }
 0x127   : > { %v595_v52 = vpack.c.bf16 %v569_v44, %v568_v34  ;;  %v603_v63 = vpack.c.bf16 %v585_v57, %v584_v49 }
 0x128   : > { %v594_v55 = vpack.c.bf16 %v567_v48, %v566_v47  ;;  %v2910_v56 = vpop.f32.mrb[12].mxu0  ;;  %v602_v3 = vpack.c.bf16 %v583_v60, %v582_v53  ;;  %v2926_v5 = vpop.f32.mrb[12].mxu1 }
 0x129   : > { %v488_v58 = vadd.f32 %v2910_v56, %v3732_v36  ;;  %v479_v59 = vpop.f32.mrb[13].mxu0  ;;  %v552_v7 = vadd.f32 %v2926_v5, %v3732_v36  ;;  %v543_v9 = vpop.f32.mrb[13].mxu1  ;;  %3027 = vmatpush3.bf16.msra.mxu1 %v3309_v28 }
 0x12a   : > { %v480_v61 = vadd.f32 %v479_v59, %v3732_v36  ;;  %v2911_v62 = vpop.f32.mrb[14].mxu0  ;;  %2952 = vmatprep.mubr.bf16.mxu1 %v594_v55  ;;  %v544_v11 = vadd.f32 %v543_v9, %v3732_v36  ;;  %v2927_v12 = vpop.f32.mrb[14].mxu1 }
 0x12b   : > { %v572_v0 = vmax.f32 %v488_v58, 0.0  ;;  %v491_v1 = vadd.f32 %v2911_v62, %v3732_v36  ;;  %v482_v2 = vpop.f32.mrb[15].mxu0  ;;  %2953 = vmatmul.mubr.bf16.gmra.mrb[24].mxu1 %v595_v52  ;;  %v588_v15 = vmax.f32 %v552_v7, 0.0  ;;  %v555_v16 = vadd.f32 %v2927_v12, %v3732_v36  ;;  %v546_v17 = vpop.f32.mrb[15].mxu1 }
 0x12c   : > { %v483_v6 = vadd.f32 %v482_v2, %v3732_v36  ;;  %v570_v13 = vmax.f32 %v480_v61, 0.0  ;;  %v586_v19 = vmax.f32 %v544_v11, 0.0  ;;  %v547_v20 = vadd.f32 %v546_v17, %v3732_v36  ;;  %v3307_v36 = vld [vmem:[#allocation2 + $0x78] sm:$0xff]  }
 0x12d   : > { %v573_v10 = vmax.f32 %v491_v1, 0.0  ;;  %v589_v22 = vmax.f32 %v555_v16, 0.0  ;;  %2990 = vmatprep.subr.bf16.mxu0 %v3307_v36 }
 0x12e   : > { %v571_v14 = vmax.f32 %v483_v6, 0.0  ;;  %v587_v23 = vmax.f32 %v547_v20, 0.0  ;;  %2991 = vmatpush3.bf16.msra.mxu0 %v3307_v36 }
 0x12f   : > { %v597_v18 = vpack.c.bf16 %v573_v10, %v572_v0  ;;  %v605_v24 = vpack.c.bf16 %v589_v22, %v588_v15 }
 0x130   : > { %v596_v21 = vpack.c.bf16 %v571_v14, %v570_v13  ;;  %v604_v25 = vpack.c.bf16 %v587_v23, %v586_v19 }
 0x132   : > { %2956 = vmatprep.mubr.bf16.mxu1 %v596_v21 }
 0x133   : > { %2957 = vmatmul.mubr.bf16.gmra.mrb[28].mxu1 %v597_v18 }
 0x134   : > { %2960 = vmatprep.mubr.bf16.mxu1 %v3747_v8  ;;  %v3310_v8 = vld [vmem:[#allocation2 + $0x90] sm:$0xff]  }
 0x135   : > { %3028 = vmatprep.subr.bf16.mxu1 %v3310_v8 }
 0x136   : > { %3029 = vmatpush3.bf16.msra.mxu1 %v3310_v8 }
 0x13b   : > { %2961 = vmatmul.mubr.bf16.gmra.mrb[32].mxu1 %v3744_v4  ;;  %v3311_v4 = vld [vmem:[#allocation2 + $0x98] sm:$0xff]  }
 0x13c   : > { %2964 = vmatprep.mubr.bf16.mxu1 %v600_v39  ;;  %3030 = vmatprep.subr.bf16.mxu1 %v3311_v4 }
 0x13d   : > { %3031 = vmatpush3.bf16.msra.mxu1 %v3311_v4 }
 0x13e   : > { %3032 = vmatprep.subr.bf16.mxu1 %v3312_v29 }
 0x141   : > { %3033 = vmatpush3.bf16.msra.mxu1 %v3312_v29 }
 0x142   : > { %3034 = vmatprep.subr.bf16.mxu1 %v3313_v30 }
 0x143   : > { %2965 = vmatmul.mubr.bf16.gmra.mrb[36].mxu1 %v601_v32  ;;  %v624_v32 = vsub.s32 1, %v3723_v33 }
 0x144   : > { %2968 = vmatprep.mubr.bf16.mxu1 %v602_v3 }
 0x145   : > { %3035 = vmatpush3.bf16.msra.mxu1 %v3313_v30  ;;  %v3774_v34 = vrot.slane %v3729_v35, %v624_v32 }
 0x146   : > { %3036 = vmatprep.subr.bf16.mxu1 %v3314_v31 }
 0x149   : > { %3037 = vmatpush3.bf16.msra.mxu1 %v3314_v31 }
 0x14b   : > { %2969 = vmatmul.mubr.bf16.gmra.mrb[40].mxu1 %v603_v63 }
 0x14c   : > { %2972 = vmatprep.mubr.bf16.mxu1 %v604_v25 }
 0x153   : > { %2973 = vmatmul.mubr.bf16.gmra.mrb[44].mxu1 %v605_v24 }
 0x1ee   : > { %v2946_v37 = vpop.f32.mrb[16].mxu1 }
 0x1ef   : > { %v717_v38 = vadd.f32 %v2946_v37, %v3774_v34  ;;  %v708_v39 = vpop.f32.mrb[17].mxu1 }
 0x1f0   : > { %v709_v40 = vadd.f32 %v708_v39, %v3774_v34  ;;  %v2947_v41 = vpop.f32.mrb[18].mxu1 }
 0x1f1   : > { %v720_v42 = vadd.f32 %v2947_v41, %v3774_v34  ;;  %v711_v43 = vpop.f32.mrb[19].mxu1  ;;  %v837_v45 = vmax.f32 %v717_v38, 0.0 }
 0x1f2   : > { %v712_v44 = vadd.f32 %v711_v43, %v3774_v34  ;;  %v835_v47 = vmax.f32 %v709_v40, 0.0 }
 0x1f3   : > { %v838_v46 = vmax.f32 %v720_v42, 0.0 }
 0x1f4   : > { %v836_v48 = vmax.f32 %v712_v44, 0.0 }
 0x1f5   : > { %v868_v49 = vpack.c.bf16 %v838_v46, %v837_v45 }
 0x1f6   : > { %v867_v50 = vpack.c.bf16 %v836_v48, %v835_v47  ;;  %v2950_v51 = vpop.f32.mrb[20].mxu1 }
 0x1f7   : > { %v733_v52 = vadd.f32 %v2950_v51, %v3774_v34  ;;  %v724_v53 = vpop.f32.mrb[21].mxu1 }
 0x1f8   : > { %v725_v54 = vadd.f32 %v724_v53, %v3774_v34  ;;  %v2951_v55 = vpop.f32.mrb[22].mxu1  ;;  %2992 = vmatprep.mubr.bf16.mxu0 %v867_v50 }
 0x1f9   : > { %v736_v56 = vadd.f32 %v2951_v55, %v3774_v34  ;;  %v727_v57 = vpop.f32.mrb[23].mxu1  ;;  %2993 = vmatmul.mubr.bf16.vlgmr.msra.gmra.mrb[16].mxu0 %v868_v49  ;;  %v841_v59 = vmax.f32 %v733_v52, 0.0 }
 0x1fa   : > { %v728_v58 = vadd.f32 %v727_v57, %v3774_v34  ;;  %v839_v61 = vmax.f32 %v725_v54, 0.0 }
 0x1fb   : > { %v842_v60 = vmax.f32 %v736_v56, 0.0 }
 0x1fc   : > { %v840_v62 = vmax.f32 %v728_v58, 0.0 }
 0x1fd   : > { %v870_v63 = vpack.c.bf16 %v842_v60, %v841_v59 }
 0x1fe   : > { %v869_v0 = vpack.c.bf16 %v840_v62, %v839_v61  ;;  %v2954_v1 = vpop.f32.mrb[24].mxu1 }
 0x1ff   : > { %v749_v2 = vadd.f32 %v2954_v1, %v3774_v34  ;;  %v740_v3 = vpop.f32.mrb[25].mxu1 }
 0x200   : > { %v741_v5 = vadd.f32 %v740_v3, %v3774_v34  ;;  %v2955_v6 = vpop.f32.mrb[26].mxu1  ;;  %2996 = vmatprep.mubr.bf16.mxu0 %v869_v0 }
 0x201   : > { %v752_v7 = vadd.f32 %v2955_v6, %v3774_v34  ;;  %v743_v9 = vpop.f32.mrb[27].mxu1  ;;  %2997 = vmatmul.mubr.bf16.gmra.mrb[20].mxu0 %v870_v63  ;;  %v845_v11 = vmax.f32 %v749_v2, 0.0 }
 0x202   : > { %v744_v10 = vadd.f32 %v743_v9, %v3774_v34  ;;  %v843_v13 = vmax.f32 %v741_v5, 0.0 }
 0x203   : > { %v846_v12 = vmax.f32 %v752_v7, 0.0 }
 0x204   : > { %v844_v14 = vmax.f32 %v744_v10, 0.0 }
 0x205   : > { %v872_v15 = vpack.c.bf16 %v846_v12, %v845_v11 }
 0x206   : > { %v871_v16 = vpack.c.bf16 %v844_v14, %v843_v13  ;;  %v2958_v17 = vpop.f32.mrb[28].mxu1 }
 0x207   : > { %v765_v18 = vadd.f32 %v2958_v17, %v3774_v34  ;;  %v756_v19 = vpop.f32.mrb[29].mxu1 }
 0x208   : > { %v757_v20 = vadd.f32 %v756_v19, %v3774_v34  ;;  %v2959_v21 = vpop.f32.mrb[30].mxu1  ;;  %3000 = vmatprep.mubr.bf16.mxu0 %v871_v16 }
 0x209   : > { %v768_v22 = vadd.f32 %v2959_v21, %v3774_v34  ;;  %v759_v23 = vpop.f32.mrb[31].mxu1  ;;  %3001 = vmatmul.mubr.bf16.gmra.mrb[24].mxu0 %v872_v15  ;;  %v849_v25 = vmax.f32 %v765_v18, 0.0 }
 0x20a   : > { %v760_v24 = vadd.f32 %v759_v23, %v3774_v34  ;;  %v847_v36 = vmax.f32 %v757_v20, 0.0 }
 0x20b   : > { %v850_v26 = vmax.f32 %v768_v22, 0.0 }
 0x20c   : > { %v848_v27 = vmax.f32 %v760_v24, 0.0 }
 0x20d   : > { %v874_v28 = vpack.c.bf16 %v850_v26, %v849_v25  ;;  %v3315_v26 = vld [vmem:[#allocation2 + $0xb8] sm:$0xff]  }
 0x20e   : > { %v873_v8 = vpack.c.bf16 %v848_v27, %v847_v36  ;;  %v2962_v4 = vpop.f32.mrb[32].mxu1  ;;  %3038 = vmatprep.subr.bf16.mxu1 %v3315_v26  ;;  %v3316_v36 = vld [vmem:[#allocation2 + $0xc0] sm:$0xff]   ;;  %v3317_v27 = vld [vmem:[#allocation2 + $0xc8] sm:$0xff]  }
 0x20f   : > { %v781_v29 = vadd.f32 %v2962_v4, %v3774_v34  ;;  %v772_v30 = vpop.f32.mrb[33].mxu1  ;;  %3039 = vmatpush3.bf16.msra.mxu1 %v3315_v26  ;;  %3072 = vmatprep.subr.bf16.mxu0 %v3316_v36  ;;  %v3321_v4 = vld [vmem:[#allocation2 + $0xe8] sm:$0xff]  }
 0x210   : > { %v773_v31 = vadd.f32 %v772_v30, %v3774_v34  ;;  %v2963_v32 = vpop.f32.mrb[34].mxu1  ;;  %3004 = vmatprep.mubr.bf16.mxu0 %v873_v8  ;;  %3073 = vmatpush3.bf16.msra.mxu0 %v3316_v36  ;;  %v3320_v8 = vld [vmem:[#allocation2 + $0xe0] sm:$0xff]   ;;  %v902_v30 = vsub.s32 2, %v3723_v33 }
 0x211   : > { %v784_v37 = vadd.f32 %v2963_v32, %v3774_v34  ;;  %v775_v38 = vpop.f32.mrb[35].mxu1  ;;  %3005 = vmatmul.mubr.bf16.gmra.mrb[28].mxu0 %v874_v28  ;;  %v853_v40 = vmax.f32 %v781_v29, 0.0  ;;  %3074 = vmatprep.subr.bf16.mxu0 %v3317_v27  ;;  %v3318_v28 = vld [vmem:[#allocation2 + $0xd0] sm:$0xff]  }
 0x212   : > { %v776_v39 = vadd.f32 %v775_v38, %v3774_v34  ;;  %v851_v42 = vmax.f32 %v773_v31, 0.0  ;;  %v3322_v29 = vld [vmem:[#allocation2 + $0xf0] sm:$0xff]   ;;  %v3810_v31 = vrot.slane %v3729_v35, %v902_v30 }
 0x213   : > { %v854_v41 = vmax.f32 %v784_v37, 0.0 }
 0x214   : > { %v852_v43 = vmax.f32 %v776_v39, 0.0  ;;  %3075 = vmatpush3.bf16.msra.mxu0 %v3317_v27 }
 0x215   : > { %v876_v44 = vpack.c.bf16 %v854_v41, %v853_v40  ;;  %3076 = vmatprep.subr.bf16.mxu0 %v3318_v28 }
 0x216   : > { %v875_v45 = vpack.c.bf16 %v852_v43, %v851_v42  ;;  %v2966_v46 = vpop.f32.mrb[36].mxu1 }
 0x217   : > { %v797_v47 = vadd.f32 %v2966_v46, %v3774_v34  ;;  %v788_v48 = vpop.f32.mrb[37].mxu1 }
 0x218   : > { %v789_v49 = vadd.f32 %v788_v48, %v3774_v34  ;;  %v2967_v50 = vpop.f32.mrb[38].mxu1  ;;  %3008 = vmatprep.mubr.bf16.mxu0 %v875_v45  ;;  %3077 = vmatpush3.bf16.msra.mxu0 %v3318_v28 }
 0x219   : > { %v800_v51 = vadd.f32 %v2967_v50, %v3774_v34  ;;  %v791_v52 = vpop.f32.mrb[39].mxu1  ;;  %3009 = vmatmul.mubr.bf16.gmra.mrb[32].mxu0 %v876_v44  ;;  %v857_v54 = vmax.f32 %v797_v47, 0.0 }
 0x21a   : > { %v792_v53 = vadd.f32 %v791_v52, %v3774_v34  ;;  %v855_v56 = vmax.f32 %v789_v49, 0.0 }
 0x21b   : > { %v858_v55 = vmax.f32 %v800_v51, 0.0 }
 0x21c   : > { %v856_v57 = vmax.f32 %v792_v53, 0.0 }
 0x21d   : > { %v878_v58 = vpack.c.bf16 %v858_v55, %v857_v54 }
 0x21e   : > { %v877_v59 = vpack.c.bf16 %v856_v57, %v855_v56  ;;  %v2970_v60 = vpop.f32.mrb[40].mxu1 }
 0x21f   : > { %v813_v61 = vadd.f32 %v2970_v60, %v3774_v34  ;;  %v804_v62 = vpop.f32.mrb[41].mxu1 }
 0x220   : > { %v805_v63 = vadd.f32 %v804_v62, %v3774_v34  ;;  %v2971_v0 = vpop.f32.mrb[42].mxu1  ;;  %3012 = vmatprep.mubr.bf16.mxu0 %v877_v59 }
 0x221   : > { %v816_v1 = vadd.f32 %v2971_v0, %v3774_v34  ;;  %v807_v2 = vpop.f32.mrb[43].mxu1  ;;  %3013 = vmatmul.mubr.bf16.gmra.mrb[36].mxu0 %v878_v58  ;;  %v861_v5 = vmax.f32 %v813_v61, 0.0 }
 0x222   : > { %v808_v3 = vadd.f32 %v807_v2, %v3774_v34  ;;  %v859_v7 = vmax.f32 %v805_v63, 0.0 }
 0x223   : > { %v862_v6 = vmax.f32 %v816_v1, 0.0 }
 0x224   : > { %v860_v9 = vmax.f32 %v808_v3, 0.0 }
 0x225   : > { %v880_v10 = vpack.c.bf16 %v862_v6, %v861_v5 }
 0x226   : > { %v879_v11 = vpack.c.bf16 %v860_v9, %v859_v7  ;;  %v2974_v12 = vpop.f32.mrb[44].mxu1 }
 0x227   : > { %v829_v13 = vadd.f32 %v2974_v12, %v3774_v34  ;;  %v820_v14 = vpop.f32.mrb[45].mxu1 }
 0x228   : > { %v821_v15 = vadd.f32 %v820_v14, %v3774_v34  ;;  %v2975_v16 = vpop.f32.mrb[46].mxu1  ;;  %3016 = vmatprep.mubr.bf16.mxu0 %v879_v11 }
 0x229   : > { %v832_v17 = vadd.f32 %v2975_v16, %v3774_v34  ;;  %v823_v18 = vpop.f32.mrb[47].mxu1  ;;  %3017 = vmatmul.mubr.bf16.gmra.mrb[40].mxu0 %v880_v10  ;;  %v865_v20 = vmax.f32 %v829_v13, 0.0 }
 0x22a   : > { %v824_v19 = vadd.f32 %v823_v18, %v3774_v34  ;;  %v863_v22 = vmax.f32 %v821_v15, 0.0  ;;  %v3319_v34 = vld [vmem:[#allocation2 + $0xd8] sm:$0xff]  }
 0x22b   : > { %v866_v21 = vmax.f32 %v832_v17, 0.0  ;;  %3078 = vmatprep.subr.bf16.mxu0 %v3319_v34 }
 0x22c   : > { %v864_v23 = vmax.f32 %v824_v19, 0.0  ;;  %3079 = vmatpush3.bf16.msra.mxu0 %v3319_v34 }
 0x22d   : > { %v882_v24 = vpack.c.bf16 %v866_v21, %v865_v20  ;;  %3080 = vmatprep.subr.bf16.mxu0 %v3320_v8 }
 0x22e   : > { %v881_v25 = vpack.c.bf16 %v864_v23, %v863_v22 }
 0x230   : > { %3020 = vmatprep.mubr.bf16.mxu0 %v881_v25  ;;  %3081 = vmatpush3.bf16.msra.mxu0 %v3320_v8 }
 0x231   : > { %3021 = vmatmul.mubr.bf16.gmra.mrb[44].mxu0 %v882_v24  ;;  %3082 = vmatprep.subr.bf16.mxu0 %v3321_v4 }
 0x234   : > { %3083 = vmatpush3.bf16.msra.mxu0 %v3321_v4 }
 0x235   : > { %3084 = vmatprep.subr.bf16.mxu0 %v3322_v29 }
 0x238   : > { %3085 = vmatpush3.bf16.msra.mxu0 %v3322_v29 }
 0x2cc   : > { %v2994_v32 = vpop.f32.mrb[16].mxu0 }
 0x2cd   : > { %v995_v37 = vadd.f32 %v2994_v32, %v3810_v31  ;;  %v986_v38 = vpop.f32.mrb[17].mxu0 }
 0x2ce   : > { %v987_v39 = vadd.f32 %v986_v38, %v3810_v31  ;;  %v2995_v40 = vpop.f32.mrb[18].mxu0 }
 0x2cf   : > { %v998_v41 = vadd.f32 %v2995_v40, %v3810_v31  ;;  %v989_v42 = vpop.f32.mrb[19].mxu0  ;;  %v1115_v44 = vmax.f32 %v995_v37, 0.0 }
 0x2d0   : > { %v990_v43 = vadd.f32 %v989_v42, %v3810_v31  ;;  %v1113_v46 = vmax.f32 %v987_v39, 0.0 }
 0x2d1   : > { %v1116_v45 = vmax.f32 %v998_v41, 0.0 }
 0x2d2   : > { %v1114_v47 = vmax.f32 %v990_v43, 0.0 }
 0x2d3   : > { %v1146_v48 = vpack.c.bf16 %v1116_v45, %v1115_v44 }
 0x2d4   : > { %v1145_v49 = vpack.c.bf16 %v1114_v47, %v1113_v46  ;;  %v2998_v50 = vpop.f32.mrb[20].mxu0 }
 0x2d5   : > { %v1011_v51 = vadd.f32 %v2998_v50, %v3810_v31  ;;  %v1002_v52 = vpop.f32.mrb[21].mxu0 }
 0x2d6   : > { %v1003_v53 = vadd.f32 %v1002_v52, %v3810_v31  ;;  %v2999_v54 = vpop.f32.mrb[22].mxu0  ;;  %3040 = vmatprep.mubr.bf16.mxu1 %v1145_v49 }
 0x2d7   : > { %v1014_v55 = vadd.f32 %v2999_v54, %v3810_v31  ;;  %v1005_v56 = vpop.f32.mrb[23].mxu0  ;;  %3041 = vmatmul.mubr.bf16.vlgmr.msra.gmra.mrb[48].mxu1 %v1146_v48  ;;  %v1119_v58 = vmax.f32 %v1011_v51, 0.0 }
 0x2d8   : > { %v1006_v57 = vadd.f32 %v1005_v56, %v3810_v31  ;;  %v1117_v60 = vmax.f32 %v1003_v53, 0.0 }
 0x2d9   : > { %v1120_v59 = vmax.f32 %v1014_v55, 0.0 }
 0x2da   : > { %v1118_v61 = vmax.f32 %v1006_v57, 0.0 }
 0x2db   : > { %v1148_v62 = vpack.c.bf16 %v1120_v59, %v1119_v58 }
 0x2dc   : > { %v1147_v63 = vpack.c.bf16 %v1118_v61, %v1117_v60  ;;  %v3002_v0 = vpop.f32.mrb[24].mxu0 }
 0x2dd   : > { %v1027_v1 = vadd.f32 %v3002_v0, %v3810_v31  ;;  %v1018_v2 = vpop.f32.mrb[25].mxu0 }
 0x2de   : > { %v1019_v3 = vadd.f32 %v1018_v2, %v3810_v31  ;;  %v3003_v5 = vpop.f32.mrb[26].mxu0  ;;  %3044 = vmatprep.mubr.bf16.mxu1 %v1147_v63 }
 0x2df   : > { %v1030_v6 = vadd.f32 %v3003_v5, %v3810_v31  ;;  %v1021_v7 = vpop.f32.mrb[27].mxu0  ;;  %3045 = vmatmul.mubr.bf16.gmra.mrb[52].mxu1 %v1148_v62  ;;  %v1123_v10 = vmax.f32 %v1027_v1, 0.0 }
 0x2e0   : > { %v1022_v9 = vadd.f32 %v1021_v7, %v3810_v31  ;;  %v1121_v12 = vmax.f32 %v1019_v3, 0.0 }
 0x2e1   : > { %v1124_v11 = vmax.f32 %v1030_v6, 0.0 }
 0x2e2   : > { %v1122_v13 = vmax.f32 %v1022_v9, 0.0 }
 0x2e3   : > { %v1150_v14 = vpack.c.bf16 %v1124_v11, %v1123_v10 }
 0x2e4   : > { %v1149_v15 = vpack.c.bf16 %v1122_v13, %v1121_v12  ;;  %v3006_v16 = vpop.f32.mrb[28].mxu0 }
 0x2e5   : > { %v1043_v17 = vadd.f32 %v3006_v16, %v3810_v31  ;;  %v1034_v18 = vpop.f32.mrb[29].mxu0 }
 0x2e6   : > { %v1035_v19 = vadd.f32 %v1034_v18, %v3810_v31  ;;  %v3007_v20 = vpop.f32.mrb[30].mxu0  ;;  %3048 = vmatprep.mubr.bf16.mxu1 %v1149_v15 }
 0x2e7   : > { %v1046_v21 = vadd.f32 %v3007_v20, %v3810_v31  ;;  %v1037_v22 = vpop.f32.mrb[31].mxu0  ;;  %3049 = vmatmul.mubr.bf16.gmra.mrb[56].mxu1 %v1150_v14  ;;  %v1127_v24 = vmax.f32 %v1043_v17, 0.0 }
 0x2e8   : > { %v1038_v23 = vadd.f32 %v1037_v22, %v3810_v31  ;;  %v1125_v26 = vmax.f32 %v1035_v19, 0.0 }
 0x2e9   : > { %v1128_v25 = vmax.f32 %v1046_v21, 0.0 }
 0x2ea   : > { %v1126_v36 = vmax.f32 %v1038_v23, 0.0 }
 0x2eb   : > { %v1152_v27 = vpack.c.bf16 %v1128_v25, %v1127_v24  ;;  %v3323_v25 = vld [vmem:[#allocation2 + $0xf8] sm:$0xff]  }
 0x2ec   : > { %v1151_v28 = vpack.c.bf16 %v1126_v36, %v1125_v26  ;;  %v3010_v34 = vpop.f32.mrb[32].mxu0  ;;  %3086 = vmatprep.subr.bf16.mxu0 %v3323_v25  ;;  %v3324_v26 = vld [vmem:[#allocation2 + $0x100] sm:$0xff]   ;;  %v3325_v36 = vld [vmem:[#allocation2 + $0x108] sm:$0xff]  }
 0x2ed   : > { %v1059_v8 = vadd.f32 %v3010_v34, %v3810_v31  ;;  %v1050_v4 = vpop.f32.mrb[33].mxu0  ;;  %3087 = vmatpush3.bf16.msra.mxu0 %v3323_v25  ;;  %3120 = vmatprep.subr.bf16.mxu1 %v3324_v26  ;;  %v3329_v34 = vld [vmem:[#allocation2 + $0x128] sm:$0xff]  }
 0x2ee   : > { %v1051_v29 = vadd.f32 %v1050_v4, %v3810_v31  ;;  %v3011_v30 = vpop.f32.mrb[34].mxu0  ;;  %3052 = vmatprep.mubr.bf16.mxu1 %v1151_v28  ;;  %3121 = vmatpush3.bf16.msra.mxu1 %v3324_v26  ;;  %v3328_v28 = vld [vmem:[#allocation2 + $0x120] sm:$0xff]   ;;  %v1180_v4 = vsub.s32 3, %v3723_v33 }
 0x2ef   : > { %v1062_v32 = vadd.f32 %v3011_v30, %v3810_v31  ;;  %v1053_v37 = vpop.f32.mrb[35].mxu0  ;;  %3053 = vmatmul.mubr.bf16.gmra.mrb[60].mxu1 %v1152_v27  ;;  %v1131_v39 = vmax.f32 %v1059_v8, 0.0  ;;  %3122 = vmatprep.subr.bf16.mxu1 %v3325_v36  ;;  %v3326_v27 = vld [vmem:[#allocation2 + $0x110] sm:$0xff]  }
 0x2f0   : > { %v1054_v38 = vadd.f32 %v1053_v37, %v3810_v31  ;;  %v1129_v41 = vmax.f32 %v1051_v29, 0.0  ;;  %v3330_v8 = vld [vmem:[#allocation2 + $0x130] sm:$0xff]   ;;  %v3846_v29 = vrot.slane %v3729_v35, %v1180_v4 }
 0x2f1   : > { %v1132_v40 = vmax.f32 %v1062_v32, 0.0 }
 0x2f2   : > { %v1130_v42 = vmax.f32 %v1054_v38, 0.0  ;;  %3123 = vmatpush3.bf16.msra.mxu1 %v3325_v36 }
 0x2f3   : > { %v1154_v43 = vpack.c.bf16 %v1132_v40, %v1131_v39  ;;  %3124 = vmatprep.subr.bf16.mxu1 %v3326_v27 }
 0x2f4   : > { %v1153_v44 = vpack.c.bf16 %v1130_v42, %v1129_v41  ;;  %v3014_v45 = vpop.f32.mrb[36].mxu0 }
 0x2f5   : > { %v1075_v46 = vadd.f32 %v3014_v45, %v3810_v31  ;;  %v1066_v47 = vpop.f32.mrb[37].mxu0 }
 0x2f6   : > { %v1067_v48 = vadd.f32 %v1066_v47, %v3810_v31  ;;  %v3015_v49 = vpop.f32.mrb[38].mxu0  ;;  %3056 = vmatprep.mubr.bf16.mxu1 %v1153_v44  ;;  %3125 = vmatpush3.bf16.msra.mxu1 %v3326_v27 }
 0x2f7   : > { %v1078_v50 = vadd.f32 %v3015_v49, %v3810_v31  ;;  %v1069_v51 = vpop.f32.mrb[39].mxu0  ;;  %3057 = vmatmul.mubr.bf16.gmra.mrb[64].mxu1 %v1154_v43  ;;  %v1135_v53 = vmax.f32 %v1075_v46, 0.0 }
 0x2f8   : > { %v1070_v52 = vadd.f32 %v1069_v51, %v3810_v31  ;;  %v1133_v55 = vmax.f32 %v1067_v48, 0.0 }
 0x2f9   : > { %v1136_v54 = vmax.f32 %v1078_v50, 0.0 }
 0x2fa   : > { %v1134_v56 = vmax.f32 %v1070_v52, 0.0 }
 0x2fb   : > { %v1156_v57 = vpack.c.bf16 %v1136_v54, %v1135_v53 }
 0x2fc   : > { %v1155_v58 = vpack.c.bf16 %v1134_v56, %v1133_v55  ;;  %v3018_v59 = vpop.f32.mrb[40].mxu0 }
 0x2fd   : > { %v1091_v60 = vadd.f32 %v3018_v59, %v3810_v31  ;;  %v1082_v61 = vpop.f32.mrb[41].mxu0 }
 0x2fe   : > { %v1083_v62 = vadd.f32 %v1082_v61, %v3810_v31  ;;  %v3019_v63 = vpop.f32.mrb[42].mxu0  ;;  %3060 = vmatprep.mubr.bf16.mxu1 %v1155_v58 }
 0x2ff   : > { %v1094_v0 = vadd.f32 %v3019_v63, %v3810_v31  ;;  %v1085_v1 = vpop.f32.mrb[43].mxu0  ;;  %3061 = vmatmul.mubr.bf16.gmra.mrb[68].mxu1 %v1156_v57  ;;  %v1139_v3 = vmax.f32 %v1091_v60, 0.0 }
 0x300   : > { %v1086_v2 = vadd.f32 %v1085_v1, %v3810_v31  ;;  %v1137_v6 = vmax.f32 %v1083_v62, 0.0 }
 0x301   : > { %v1140_v5 = vmax.f32 %v1094_v0, 0.0 }
 0x302   : > { %v1138_v7 = vmax.f32 %v1086_v2, 0.0 }
 0x303   : > { %v1158_v9 = vpack.c.bf16 %v1140_v5, %v1139_v3 }
 0x304   : > { %v1157_v10 = vpack.c.bf16 %v1138_v7, %v1137_v6  ;;  %v3022_v11 = vpop.f32.mrb[44].mxu0 }
 0x305   : > { %v1107_v12 = vadd.f32 %v3022_v11, %v3810_v31  ;;  %v1098_v13 = vpop.f32.mrb[45].mxu0 }
 0x306   : > { %v1099_v14 = vadd.f32 %v1098_v13, %v3810_v31  ;;  %v3023_v15 = vpop.f32.mrb[46].mxu0  ;;  %3064 = vmatprep.mubr.bf16.mxu1 %v1157_v10 }
 0x307   : > { %v1110_v16 = vadd.f32 %v3023_v15, %v3810_v31  ;;  %v1101_v17 = vpop.f32.mrb[47].mxu0  ;;  %3065 = vmatmul.mubr.bf16.gmra.mrb[72].mxu1 %v1158_v9  ;;  %v1143_v19 = vmax.f32 %v1107_v12, 0.0 }
 0x308   : > { %v1102_v18 = vadd.f32 %v1101_v17, %v3810_v31  ;;  %v1141_v21 = vmax.f32 %v1099_v14, 0.0  ;;  %v3327_v31 = vld [vmem:[#allocation2 + $0x118] sm:$0xff]  }
 0x309   : > { %v1144_v20 = vmax.f32 %v1110_v16, 0.0  ;;  %3126 = vmatprep.subr.bf16.mxu1 %v3327_v31 }
 0x30a   : > { %v1142_v22 = vmax.f32 %v1102_v18, 0.0  ;;  %3127 = vmatpush3.bf16.msra.mxu1 %v3327_v31 }
 0x30b   : > { %v1160_v23 = vpack.c.bf16 %v1144_v20, %v1143_v19  ;;  %3128 = vmatprep.subr.bf16.mxu1 %v3328_v28 }
 0x30c   : > { %v1159_v24 = vpack.c.bf16 %v1142_v22, %v1141_v21 }
 0x30e   : > { %3068 = vmatprep.mubr.bf16.mxu1 %v1159_v24  ;;  %3129 = vmatpush3.bf16.msra.mxu1 %v3328_v28 }
 0x30f   : > { %3069 = vmatmul.mubr.bf16.gmra.mrb[76].mxu1 %v1160_v23  ;;  %3130 = vmatprep.subr.bf16.mxu1 %v3329_v34 }
 0x312   : > { %3131 = vmatpush3.bf16.msra.mxu1 %v3329_v34 }
 0x313   : > { %3132 = vmatprep.subr.bf16.mxu1 %v3330_v8 }
 0x316   : > { %3133 = vmatpush3.bf16.msra.mxu1 %v3330_v8 }
 0x3aa   : > { %v3042_v30 = vpop.f32.mrb[48].mxu1 }
 0x3ab   : > { %v1273_v32 = vadd.f32 %v3042_v30, %v3846_v29  ;;  %v1264_v37 = vpop.f32.mrb[49].mxu1 }
 0x3ac   : > { %v1265_v38 = vadd.f32 %v1264_v37, %v3846_v29  ;;  %v3043_v39 = vpop.f32.mrb[50].mxu1 }
 0x3ad   : > { %v1276_v40 = vadd.f32 %v3043_v39, %v3846_v29  ;;  %v1267_v41 = vpop.f32.mrb[51].mxu1  ;;  %v1393_v43 = vmax.f32 %v1273_v32, 0.0 }
 0x3ae   : > { %v1268_v42 = vadd.f32 %v1267_v41, %v3846_v29  ;;  %v1391_v45 = vmax.f32 %v1265_v38, 0.0 }
 0x3af   : > { %v1394_v44 = vmax.f32 %v1276_v40, 0.0 }
 0x3b0   : > { %v1392_v46 = vmax.f32 %v1268_v42, 0.0 }
 0x3b1   : > { %v1424_v47 = vpack.c.bf16 %v1394_v44, %v1393_v43 }
 0x3b2   : > { %v1423_v48 = vpack.c.bf16 %v1392_v46, %v1391_v45  ;;  %v3046_v35 = vpop.f32.mrb[52].mxu1 }
 0x3b3   : > { %v1289_v49 = vadd.f32 %v3046_v35, %v3846_v29  ;;  %v1280_v50 = vpop.f32.mrb[53].mxu1 }
 0x3b4   : > { %v1281_v51 = vadd.f32 %v1280_v50, %v3846_v29  ;;  %v3047_v52 = vpop.f32.mrb[54].mxu1  ;;  %3088 = vmatprep.mubr.bf16.mxu0 %v1423_v48 }
 0x3b5   : > { %v1292_v53 = vadd.f32 %v3047_v52, %v3846_v29  ;;  %v1283_v54 = vpop.f32.mrb[55].mxu1  ;;  %3089 = vmatmul.mubr.bf16.vlgmr.msra.gmra.mrb[48].mxu0 %v1424_v47  ;;  %v1397_v56 = vmax.f32 %v1289_v49, 0.0 }
 0x3b6   : > { %v1284_v55 = vadd.f32 %v1283_v54, %v3846_v29  ;;  %v1395_v58 = vmax.f32 %v1281_v51, 0.0 }
 0x3b7   : > { %v1398_v57 = vmax.f32 %v1292_v53, 0.0 }
 0x3b8   : > { %v1396_v59 = vmax.f32 %v1284_v55, 0.0 }
 0x3b9   : > { %v1426_v60 = vpack.c.bf16 %v1398_v57, %v1397_v56 }
 0x3ba   : > { %v1425_v61 = vpack.c.bf16 %v1396_v59, %v1395_v58  ;;  %v3050_v62 = vpop.f32.mrb[56].mxu1 }
 0x3bb   : > { %v1305_v63 = vadd.f32 %v3050_v62, %v3846_v29  ;;  %v1296_v0 = vpop.f32.mrb[57].mxu1 }
 0x3bc   : > { %v1297_v1 = vadd.f32 %v1296_v0, %v3846_v29  ;;  %v3051_v2 = vpop.f32.mrb[58].mxu1  ;;  %3092 = vmatprep.mubr.bf16.mxu0 %v1425_v61 }
 0x3bd   : > { %v1308_v3 = vadd.f32 %v3051_v2, %v3846_v29  ;;  %v1299_v5 = vpop.f32.mrb[59].mxu1  ;;  %3093 = vmatmul.mubr.bf16.gmra.mrb[52].mxu0 %v1426_v60  ;;  %v1401_v7 = vmax.f32 %v1305_v63, 0.0 }
 0x3be   : > { %v1300_v6 = vadd.f32 %v1299_v5, %v3846_v29  ;;  %v1399_v10 = vmax.f32 %v1297_v1, 0.0 }
 0x3bf   : > { %v1402_v9 = vmax.f32 %v1308_v3, 0.0 }
 0x3c0   : > { %v1400_v11 = vmax.f32 %v1300_v6, 0.0 }
 0x3c1   : > { %v1428_v12 = vpack.c.bf16 %v1402_v9, %v1401_v7 }
 0x3c2   : > { %v1427_v13 = vpack.c.bf16 %v1400_v11, %v1399_v10  ;;  %v3054_v14 = vpop.f32.mrb[60].mxu1 }
 0x3c3   : > { %v1321_v15 = vadd.f32 %v3054_v14, %v3846_v29  ;;  %v1312_v16 = vpop.f32.mrb[61].mxu1 }
 0x3c4   : > { %v1313_v17 = vadd.f32 %v1312_v16, %v3846_v29  ;;  %v3055_v18 = vpop.f32.mrb[62].mxu1  ;;  %3096 = vmatprep.mubr.bf16.mxu0 %v1427_v13 }
 0x3c5   : > { %v1324_v19 = vadd.f32 %v3055_v18, %v3846_v29  ;;  %v1315_v20 = vpop.f32.mrb[63].mxu1  ;;  %3097 = vmatmul.mubr.bf16.gmra.mrb[56].mxu0 %v1428_v12  ;;  %v1405_v22 = vmax.f32 %v1321_v15, 0.0 }
 0x3c6   : > { %v1316_v21 = vadd.f32 %v1315_v20, %v3846_v29  ;;  %v1403_v24 = vmax.f32 %v1313_v17, 0.0 }
 0x3c7   : > { %v1406_v23 = vmax.f32 %v1324_v19, 0.0 }
 0x3c8   : > { %v1404_v25 = vmax.f32 %v1316_v21, 0.0 }
 0x3c9   : > { %v1430_v26 = vpack.c.bf16 %v1406_v23, %v1405_v22  ;;  %v3331_v22 = vld [vmem:[#allocation2 + $0x138] sm:$0xff]   ;;  %v3332_v23 = vld [vmem:[#allocation2 + $0x140] sm:$0xff]  }
 0x3ca   : > { %v1429_v36 = vpack.c.bf16 %v1404_v25, %v1403_v24  ;;  %v3058_v27 = vpop.f32.mrb[64].mxu1  ;;  %3134 = vmatprep.subr.bf16.mxu1 %v3331_v22  ;;  %v3333_v24 = vld [vmem:[#allocation2 + $0x148] sm:$0xff]   ;;  %3168 = vmatprep.subr.bf16.mxu0 %v3332_v23  ;;  %v3334_v25 = vld [vmem:[#allocation2 + $0x150] sm:$0xff]  }
 0x3cb   : > { %v1337_v31 = vadd.f32 %v3058_v27, %v3846_v29  ;;  %v1328_v28 = vpop.f32.mrb[65].mxu1  ;;  %3135 = vmatpush3.bf16.msra.mxu1 %v3331_v22  ;;  %3169 = vmatpush3.bf16.msra.mxu0 %v3332_v23  ;;  %v3338_v27 = vld [vmem:[#allocation2 + $0x170] sm:$0xff]  }
 0x3cc   : > { %v1329_v34 = vadd.f32 %v1328_v28, %v3846_v29  ;;  %v3059_v8 = vpop.f32.mrb[66].mxu1  ;;  %3100 = vmatprep.mubr.bf16.mxu0 %v1429_v36  ;;  %3170 = vmatprep.subr.bf16.mxu0 %v3333_v24  ;;  %v3337_v36 = vld [vmem:[#allocation2 + $0x168] sm:$0xff]   ;;  %v3884_v28 = vld [vmem:[%s4341_s3] sm:$0xff] }
 0x3cd   : > { %v1340_v4 = vadd.f32 %v3059_v8, %v3846_v29  ;;  %v1331_v30 = vpop.f32.mrb[67].mxu1  ;;  %3101 = vmatmul.mubr.bf16.gmra.mrb[60].mxu0 %v1430_v26  ;;  %v1409_v37 = vmax.f32 %v1337_v31, 0.0  ;;  %v3336_v26 = vld [vmem:[#allocation2 + $0x160] sm:$0xff]   ;;  %v1458_v31 = vsub.s32 4, %v3723_v33 }
 0x3ce   : > { %v1332_v32 = vadd.f32 %v1331_v30, %v3846_v29  ;;  %v1407_v39 = vmax.f32 %v1329_v34, 0.0 }
 0x3cf   : > { %v1410_v38 = vmax.f32 %v1340_v4, 0.0  ;;  %3171 = vmatpush3.bf16.msra.mxu0 %v3333_v24  ;;  %v3887_v34 = vrot.slane %v3884_v28, %v1458_v31 }
 0x3d0   : > { %v1408_v40 = vmax.f32 %v1332_v32, 0.0  ;;  %3172 = vmatprep.subr.bf16.mxu0 %v3334_v25 }
 0x3d1   : > { %v1432_v41 = vpack.c.bf16 %v1410_v38, %v1409_v37 }
 0x3d2   : > { %v1431_v42 = vpack.c.bf16 %v1408_v40, %v1407_v39  ;;  %v3062_v43 = vpop.f32.mrb[68].mxu1 }
 0x3d3   : > { %v1353_v44 = vadd.f32 %v3062_v43, %v3846_v29  ;;  %v1344_v45 = vpop.f32.mrb[69].mxu1  ;;  %3173 = vmatpush3.bf16.msra.mxu0 %v3334_v25 }
 0x3d4   : > { %v1345_v46 = vadd.f32 %v1344_v45, %v3846_v29  ;;  %v3063_v47 = vpop.f32.mrb[70].mxu1  ;;  %3104 = vmatprep.mubr.bf16.mxu0 %v1431_v42 }
 0x3d5   : > { %v1356_v48 = vadd.f32 %v3063_v47, %v3846_v29  ;;  %v1347_v35 = vpop.f32.mrb[71].mxu1  ;;  %3105 = vmatmul.mubr.bf16.gmra.mrb[64].mxu0 %v1432_v41  ;;  %v1413_v50 = vmax.f32 %v1353_v44, 0.0 }
 0x3d6   : > { %v1348_v49 = vadd.f32 %v1347_v35, %v3846_v29  ;;  %v1411_v52 = vmax.f32 %v1345_v46, 0.0 }
 0x3d7   : > { %v1414_v51 = vmax.f32 %v1356_v48, 0.0 }
 0x3d8   : > { %v1412_v53 = vmax.f32 %v1348_v49, 0.0 }
 0x3d9   : > { %v1434_v54 = vpack.c.bf16 %v1414_v51, %v1413_v50 }
 0x3da   : > { %v1433_v55 = vpack.c.bf16 %v1412_v53, %v1411_v52  ;;  %v3066_v56 = vpop.f32.mrb[72].mxu1 }
 0x3db   : > { %v1369_v57 = vadd.f32 %v3066_v56, %v3846_v29  ;;  %v1360_v58 = vpop.f32.mrb[73].mxu1 }
 0x3dc   : > { %v1361_v59 = vadd.f32 %v1360_v58, %v3846_v29  ;;  %v3067_v60 = vpop.f32.mrb[74].mxu1  ;;  %3108 = vmatprep.mubr.bf16.mxu0 %v1433_v55 }
 0x3dd   : > { %v1372_v61 = vadd.f32 %v3067_v60, %v3846_v29  ;;  %v1363_v62 = vpop.f32.mrb[75].mxu1  ;;  %3109 = vmatmul.mubr.bf16.gmra.mrb[68].mxu0 %v1434_v54  ;;  %v1417_v0 = vmax.f32 %v1369_v57, 0.0 }
 0x3de   : > { %v1364_v63 = vadd.f32 %v1363_v62, %v3846_v29  ;;  %v1415_v2 = vmax.f32 %v1361_v59, 0.0 }
 0x3df   : > { %v1418_v1 = vmax.f32 %v1372_v61, 0.0 }
 0x3e0   : > { %v1416_v3 = vmax.f32 %v1364_v63, 0.0 }
 0x3e1   : > { %v1436_v5 = vpack.c.bf16 %v1418_v1, %v1417_v0 }
 0x3e2   : > { %v1435_v6 = vpack.c.bf16 %v1416_v3, %v1415_v2  ;;  %v3070_v7 = vpop.f32.mrb[76].mxu1 }
 0x3e3   : > { %v1385_v9 = vadd.f32 %v3070_v7, %v3846_v29  ;;  %v1376_v10 = vpop.f32.mrb[77].mxu1 }
 0x3e4   : > { %v1377_v11 = vadd.f32 %v1376_v10, %v3846_v29  ;;  %v3071_v12 = vpop.f32.mrb[78].mxu1  ;;  %3112 = vmatprep.mubr.bf16.mxu0 %v1435_v6 }
 0x3e5   : > { %v1388_v13 = vadd.f32 %v3071_v12, %v3846_v29  ;;  %v1379_v14 = vpop.f32.mrb[79].mxu1  ;;  %3113 = vmatmul.mubr.bf16.gmra.mrb[72].mxu0 %v1436_v5  ;;  %v1421_v16 = vmax.f32 %v1385_v9, 0.0 }
 0x3e6   : > { %v1380_v15 = vadd.f32 %v1379_v14, %v3846_v29  ;;  %v1419_v18 = vmax.f32 %v1377_v11, 0.0  ;;  %v3335_v29 = vld [vmem:[#allocation2 + $0x158] sm:$0xff]  }
 0x3e7   : > { %v1422_v17 = vmax.f32 %v1388_v13, 0.0  ;;  %3174 = vmatprep.subr.bf16.mxu0 %v3335_v29 }
 0x3e8   : > { %v1420_v19 = vmax.f32 %v1380_v15, 0.0  ;;  %3175 = vmatpush3.bf16.msra.mxu0 %v3335_v29 }
 0x3e9   : > { %v1438_v20 = vpack.c.bf16 %v1422_v17, %v1421_v16  ;;  %3176 = vmatprep.subr.bf16.mxu0 %v3336_v26 }
 0x3ea   : > { %v1437_v21 = vpack.c.bf16 %v1420_v19, %v1419_v18 }
 0x3ec   : > { %3116 = vmatprep.mubr.bf16.mxu0 %v1437_v21  ;;  %3177 = vmatpush3.bf16.msra.mxu0 %v3336_v26 }
 0x3ed   : > { %3117 = vmatmul.mubr.bf16.gmra.mrb[76].mxu0 %v1438_v20  ;;  %3178 = vmatprep.subr.bf16.mxu0 %v3337_v36 }
 0x3f0   : > { %3179 = vmatpush3.bf16.msra.mxu0 %v3337_v36 }
 0x3f1   : > { %3180 = vmatprep.subr.bf16.mxu0 %v3338_v27 }
 0x3f4   : > { %3181 = vmatpush3.bf16.msra.mxu0 %v3338_v27 }
 0x488   : > { %v3090_v8 = vpop.f32.mrb[48].mxu0 }
 0x489   : > { %v1551_v4 = vadd.f32 %v3090_v8, %v3887_v34  ;;  %v1542_v30 = vpop.f32.mrb[49].mxu0 }
 0x48a   : > { %v1543_v32 = vadd.f32 %v1542_v30, %v3887_v34  ;;  %v3091_v37 = vpop.f32.mrb[50].mxu0 }
 0x48b   : > { %v1554_v38 = vadd.f32 %v3091_v37, %v3887_v34  ;;  %v1545_v39 = vpop.f32.mrb[51].mxu0  ;;  %v1671_v41 = vmax.f32 %v1551_v4, 0.0 }
 0x48c   : > { %v1546_v40 = vadd.f32 %v1545_v39, %v3887_v34  ;;  %v1669_v43 = vmax.f32 %v1543_v32, 0.0 }
 0x48d   : > { %v1672_v42 = vmax.f32 %v1554_v38, 0.0 }
 0x48e   : > { %v1670_v44 = vmax.f32 %v1546_v40, 0.0 }
 0x48f   : > { %v1702_v45 = vpack.c.bf16 %v1672_v42, %v1671_v41 }
 0x490   : > { %v1701_v46 = vpack.c.bf16 %v1670_v44, %v1669_v43  ;;  %v3094_v47 = vpop.f32.mrb[52].mxu0 }
 0x491   : > { %v1567_v48 = vadd.f32 %v3094_v47, %v3887_v34  ;;  %v1558_v35 = vpop.f32.mrb[53].mxu0 }
 0x492   : > { %v1559_v49 = vadd.f32 %v1558_v35, %v3887_v34  ;;  %v3095_v50 = vpop.f32.mrb[54].mxu0  ;;  %3136 = vmatprep.mubr.bf16.mxu1 %v1701_v46 }
 0x493   : > { %v1570_v51 = vadd.f32 %v3095_v50, %v3887_v34  ;;  %v1561_v52 = vpop.f32.mrb[55].mxu0  ;;  %3137 = vmatmul.mubr.bf16.vlgmr.msra.gmra.mrb[80].mxu1 %v1702_v45  ;;  %v1675_v54 = vmax.f32 %v1567_v48, 0.0 }
 0x494   : > { %v1562_v53 = vadd.f32 %v1561_v52, %v3887_v34  ;;  %v1673_v56 = vmax.f32 %v1559_v49, 0.0 }
 0x495   : > { %v1676_v55 = vmax.f32 %v1570_v51, 0.0 }
 0x496   : > { %v1674_v57 = vmax.f32 %v1562_v53, 0.0 }
 0x497   : > { %v1704_v58 = vpack.c.bf16 %v1676_v55, %v1675_v54 }
 0x498   : > { %v1703_v59 = vpack.c.bf16 %v1674_v57, %v1673_v56  ;;  %v3098_v60 = vpop.f32.mrb[56].mxu0 }
 0x499   : > { %v1583_v61 = vadd.f32 %v3098_v60, %v3887_v34  ;;  %v1574_v62 = vpop.f32.mrb[57].mxu0 }
 0x49a   : > { %v1575_v63 = vadd.f32 %v1574_v62, %v3887_v34  ;;  %v3099_v0 = vpop.f32.mrb[58].mxu0  ;;  %3140 = vmatprep.mubr.bf16.mxu1 %v1703_v59 }
 0x49b   : > { %v1586_v1 = vadd.f32 %v3099_v0, %v3887_v34  ;;  %v1577_v2 = vpop.f32.mrb[59].mxu0  ;;  %3141 = vmatmul.mubr.bf16.gmra.mrb[84].mxu1 %v1704_v58  ;;  %v1679_v5 = vmax.f32 %v1583_v61, 0.0 }
 0x49c   : > { %v1578_v3 = vadd.f32 %v1577_v2, %v3887_v34  ;;  %v1677_v7 = vmax.f32 %v1575_v63, 0.0 }
 0x49d   : > { %v1680_v6 = vmax.f32 %v1586_v1, 0.0 }
 0x49e   : > { %v1678_v9 = vmax.f32 %v1578_v3, 0.0 }
 0x49f   : > { %v1706_v10 = vpack.c.bf16 %v1680_v6, %v1679_v5 }
 0x4a0   : > { %v1705_v11 = vpack.c.bf16 %v1678_v9, %v1677_v7  ;;  %v3102_v12 = vpop.f32.mrb[60].mxu0 }
 0x4a1   : > { %v1599_v13 = vadd.f32 %v3102_v12, %v3887_v34  ;;  %v1590_v14 = vpop.f32.mrb[61].mxu0 }
 0x4a2   : > { %v1591_v15 = vadd.f32 %v1590_v14, %v3887_v34  ;;  %v3103_v16 = vpop.f32.mrb[62].mxu0  ;;  %3144 = vmatprep.mubr.bf16.mxu1 %v1705_v11 }
 0x4a3   : > { %v1602_v17 = vadd.f32 %v3103_v16, %v3887_v34  ;;  %v1593_v18 = vpop.f32.mrb[63].mxu0  ;;  %3145 = vmatmul.mubr.bf16.gmra.mrb[88].mxu1 %v1706_v10  ;;  %v1683_v20 = vmax.f32 %v1599_v13, 0.0 }
 0x4a4   : > { %v1594_v19 = vadd.f32 %v1593_v18, %v3887_v34  ;;  %v1681_v22 = vmax.f32 %v1591_v15, 0.0 }
 0x4a5   : > { %v1684_v21 = vmax.f32 %v1602_v17, 0.0 }
 0x4a6   : > { %v1682_v23 = vmax.f32 %v1594_v19, 0.0 }
 0x4a7   : > { %v1708_v24 = vpack.c.bf16 %v1684_v21, %v1683_v20  ;;  %v3339_v21 = vld [vmem:[#allocation2 + $0x178] sm:$0xff]  }
 0x4a8   : > { %v1707_v25 = vpack.c.bf16 %v1682_v23, %v1681_v22  ;;  %v3106_v29 = vpop.f32.mrb[64].mxu0  ;;  %3182 = vmatprep.subr.bf16.mxu0 %v3339_v21  ;;  %v1736_v22 = vsub.s32 5, %v3723_v33 }
 0x4a9   : > { %v1615_v26 = vadd.f32 %v3106_v29, %v3887_v34  ;;  %v1606_v36 = vpop.f32.mrb[65].mxu0  ;;  %3183 = vmatpush3.bf16.msra.mxu0 %v3339_v21 }
 0x4aa   : > { %v1607_v27 = vadd.f32 %v1606_v36, %v3887_v34  ;;  %v3107_v31 = vpop.f32.mrb[66].mxu0  ;;  %3148 = vmatprep.mubr.bf16.mxu1 %v1707_v25  ;;  %v3923_v23 = vrot.slane %v3884_v28, %v1736_v22 }
 0x4ab   : > { %v1618_v8 = vadd.f32 %v3107_v31, %v3887_v34  ;;  %v1609_v4 = vpop.f32.mrb[67].mxu0  ;;  %3149 = vmatmul.mubr.bf16.gmra.mrb[92].mxu1 %v1708_v24  ;;  %v1687_v32 = vmax.f32 %v1615_v26, 0.0 }
 0x4ac   : > { %v1610_v30 = vadd.f32 %v1609_v4, %v3887_v34  ;;  %v1685_v38 = vmax.f32 %v1607_v27, 0.0 }
 0x4ad   : > { %v1688_v37 = vmax.f32 %v1618_v8, 0.0 }
 0x4ae   : > { %v1686_v39 = vmax.f32 %v1610_v30, 0.0 }
 0x4af   : > { %v1710_v40 = vpack.c.bf16 %v1688_v37, %v1687_v32 }
 0x4b0   : > { %v1709_v41 = vpack.c.bf16 %v1686_v39, %v1685_v38  ;;  %v3110_v42 = vpop.f32.mrb[68].mxu0 }
 0x4b1   : > { %v1631_v43 = vadd.f32 %v3110_v42, %v3887_v34  ;;  %v1622_v44 = vpop.f32.mrb[69].mxu0 }
 0x4b2   : > { %v1623_v45 = vadd.f32 %v1622_v44, %v3887_v34  ;;  %v3111_v46 = vpop.f32.mrb[70].mxu0  ;;  %3152 = vmatprep.mubr.bf16.mxu1 %v1709_v41 }
 0x4b3   : > { %v1634_v47 = vadd.f32 %v3111_v46, %v3887_v34  ;;  %v1625_v48 = vpop.f32.mrb[71].mxu0  ;;  %3153 = vmatmul.mubr.bf16.gmra.mrb[96].mxu1 %v1710_v40  ;;  %v1691_v49 = vmax.f32 %v1631_v43, 0.0 }
 0x4b4   : > { %v1626_v35 = vadd.f32 %v1625_v48, %v3887_v34  ;;  %v1689_v51 = vmax.f32 %v1623_v45, 0.0 }
 0x4b5   : > { %v1692_v50 = vmax.f32 %v1634_v47, 0.0 }
 0x4b6   : > { %v1690_v52 = vmax.f32 %v1626_v35, 0.0 }
 0x4b7   : > { %v1712_v53 = vpack.c.bf16 %v1692_v50, %v1691_v49 }
 0x4b8   : > { %v1711_v54 = vpack.c.bf16 %v1690_v52, %v1689_v51  ;;  %v3114_v55 = vpop.f32.mrb[72].mxu0 }
 0x4b9   : > { %v1647_v56 = vadd.f32 %v3114_v55, %v3887_v34  ;;  %v1638_v57 = vpop.f32.mrb[73].mxu0 }
 0x4ba   : > { %v1639_v58 = vadd.f32 %v1638_v57, %v3887_v34  ;;  %v3115_v59 = vpop.f32.mrb[74].mxu0  ;;  %3156 = vmatprep.mubr.bf16.mxu1 %v1711_v54 }
 0x4bb   : > { %v1650_v60 = vadd.f32 %v3115_v59, %v3887_v34  ;;  %v1641_v61 = vpop.f32.mrb[75].mxu0  ;;  %3157 = vmatmul.mubr.bf16.gmra.mrb[100].mxu1 %v1712_v53  ;;  %v1695_v63 = vmax.f32 %v1647_v56, 0.0 }
 0x4bc   : > { %v1642_v62 = vadd.f32 %v1641_v61, %v3887_v34  ;;  %v1693_v1 = vmax.f32 %v1639_v58, 0.0 }
 0x4bd   : > { %v1696_v0 = vmax.f32 %v1650_v60, 0.0 }
 0x4be   : > { %v1694_v2 = vmax.f32 %v1642_v62, 0.0 }
 0x4bf   : > { %v1714_v3 = vpack.c.bf16 %v1696_v0, %v1695_v63 }
 0x4c0   : > { %v1713_v5 = vpack.c.bf16 %v1694_v2, %v1693_v1  ;;  %v3118_v6 = vpop.f32.mrb[76].mxu0 }
 0x4c1   : > { %v1663_v7 = vadd.f32 %v3118_v6, %v3887_v34  ;;  %v1654_v9 = vpop.f32.mrb[77].mxu0 }
 0x4c2   : > { %v1655_v10 = vadd.f32 %v1654_v9, %v3887_v34  ;;  %v3119_v11 = vpop.f32.mrb[78].mxu0  ;;  %3160 = vmatprep.mubr.bf16.mxu1 %v1713_v5 }
 0x4c3   : > { %v1666_v12 = vadd.f32 %v3119_v11, %v3887_v34  ;;  %v1657_v13 = vpop.f32.mrb[79].mxu0  ;;  %3161 = vmatmul.mubr.bf16.gmra.mrb[104].mxu1 %v1714_v3  ;;  %v1699_v15 = vmax.f32 %v1663_v7, 0.0 }
 0x4c4   : > { %v1658_v14 = vadd.f32 %v1657_v13, %v3887_v34  ;;  %v1697_v17 = vmax.f32 %v1655_v10, 0.0 }
 0x4c5   : > { %v1700_v16 = vmax.f32 %v1666_v12, 0.0 }
 0x4c6   : > { %v1698_v18 = vmax.f32 %v1658_v14, 0.0 }
 0x4c7   : > { %v1716_v19 = vpack.c.bf16 %v1700_v16, %v1699_v15 }
 0x4c8   : > { %v1715_v20 = vpack.c.bf16 %v1698_v18, %v1697_v17 }
 0x4ca   : > { %3164 = vmatprep.mubr.bf16.mxu1 %v1715_v20 }
 0x4cb   : > { %3165 = vmatmul.mubr.bf16.gmra.mrb[108].mxu1 %v1716_v19 }
 0x566   : > { %v3138_v24 = vpop.f32.mrb[80].mxu1 }
 0x567   : > { %v1829_v25 = vadd.f32 %v3138_v24, %v3923_v23  ;;  %v1820_v34 = vpop.f32.mrb[81].mxu1 }
 0x568   : > { %v1821_v29 = vadd.f32 %v1820_v34, %v3923_v23  ;;  %v3139_v26 = vpop.f32.mrb[82].mxu1 }
 0x569   : > { %v1832_v36 = vadd.f32 %v3139_v26, %v3923_v23  ;;  %v1823_v27 = vpop.f32.mrb[83].mxu1  ;;  %v1949_v8 = vmax.f32 %v1829_v25, 0.0 }
 0x56a   : > { %v1824_v31 = vadd.f32 %v1823_v27, %v3923_v23  ;;  %v1947_v30 = vmax.f32 %v1821_v29, 0.0 }
 0x56b   : > { %v1950_v4 = vmax.f32 %v1832_v36, 0.0 }
 0x56c   : > { %v1948_v32 = vmax.f32 %v1824_v31, 0.0 }
 0x56d   : > { %v1980_v37 = vpack.c.bf16 %v1950_v4, %v1949_v8 }
 0x56e   : > { %v1979_v38 = vpack.c.bf16 %v1948_v32, %v1947_v30  ;;  %v3142_v39 = vpop.f32.mrb[84].mxu1 }
 0x56f   : > { %v1845_v40 = vadd.f32 %v3142_v39, %v3923_v23  ;;  %v1836_v41 = vpop.f32.mrb[85].mxu1 }
 0x570   : > { %v1837_v42 = vadd.f32 %v1836_v41, %v3923_v23  ;;  %v3143_v43 = vpop.f32.mrb[86].mxu1  ;;  %3184 = vmatprep.mubr.bf16.mxu0 %v1979_v38 }
 0x571   : > { %v1848_v44 = vadd.f32 %v3143_v43, %v3923_v23  ;;  %v1839_v45 = vpop.f32.mrb[87].mxu1  ;;  %3185 = vmatmul.mubr.bf16.vlgmr.msra.gmra.mrb[80].mxu0 %v1980_v37  ;;  %v1953_v47 = vmax.f32 %v1845_v40, 0.0 }
 0x572   : > { %v1840_v46 = vadd.f32 %v1839_v45, %v3923_v23  ;;  %v1951_v35 = vmax.f32 %v1837_v42, 0.0 }
 0x573   : > { %v1954_v48 = vmax.f32 %v1848_v44, 0.0 }
 0x574   : > { %v1952_v49 = vmax.f32 %v1840_v46, 0.0 }
 0x575   : > { %v1982_v50 = vpack.c.bf16 %v1954_v48, %v1953_v47 }
 0x576   : > { %v1981_v51 = vpack.c.bf16 %v1952_v49, %v1951_v35  ;;  %v3146_v52 = vpop.f32.mrb[88].mxu1 }
 0x577   : > { %v1861_v53 = vadd.f32 %v3146_v52, %v3923_v23  ;;  %v1852_v54 = vpop.f32.mrb[89].mxu1 }
 0x578   : > { %v1853_v55 = vadd.f32 %v1852_v54, %v3923_v23  ;;  %v3147_v56 = vpop.f32.mrb[90].mxu1  ;;  %3188 = vmatprep.mubr.bf16.mxu0 %v1981_v51 }
 0x579   : > { %v1864_v57 = vadd.f32 %v3147_v56, %v3923_v23  ;;  %v1855_v58 = vpop.f32.mrb[91].mxu1  ;;  %3189 = vmatmul.mubr.bf16.gmra.mrb[84].mxu0 %v1982_v50  ;;  %v1957_v60 = vmax.f32 %v1861_v53, 0.0 }
 0x57a   : > { %v1856_v59 = vadd.f32 %v1855_v58, %v3923_v23  ;;  %v1955_v62 = vmax.f32 %v1853_v55, 0.0 }
 0x57b   : > { %v1958_v61 = vmax.f32 %v1864_v57, 0.0 }
 0x57c   : > { %v1956_v63 = vmax.f32 %v1856_v59, 0.0 }
 0x57d   : > { %v1984_v0 = vpack.c.bf16 %v1958_v61, %v1957_v60 }
 0x57e   : > { %v1983_v1 = vpack.c.bf16 %v1956_v63, %v1955_v62  ;;  %v3150_v2 = vpop.f32.mrb[92].mxu1 }
 0x57f   : > { %v1877_v3 = vadd.f32 %v3150_v2, %v3923_v23  ;;  %v1868_v5 = vpop.f32.mrb[93].mxu1 }
 0x580   : > { %v1869_v6 = vadd.f32 %v1868_v5, %v3923_v23  ;;  %v3151_v7 = vpop.f32.mrb[94].mxu1  ;;  %3192 = vmatprep.mubr.bf16.mxu0 %v1983_v1 }
 0x581   : > { %v1880_v9 = vadd.f32 %v3151_v7, %v3923_v23  ;;  %v1871_v10 = vpop.f32.mrb[95].mxu1  ;;  %3193 = vmatmul.mubr.bf16.gmra.mrb[88].mxu0 %v1984_v0  ;;  %v1961_v12 = vmax.f32 %v1877_v3, 0.0 }
 0x582   : > { %v1872_v11 = vadd.f32 %v1871_v10, %v3923_v23  ;;  %v1959_v14 = vmax.f32 %v1869_v6, 0.0 }
 0x583   : > { %v1962_v13 = vmax.f32 %v1880_v9, 0.0 }
 0x584   : > { %v1960_v15 = vmax.f32 %v1872_v11, 0.0 }
 0x585   : > { %v1986_v16 = vpack.c.bf16 %v1962_v13, %v1961_v12  ;;  %v2014_v13 = vsub.s32 6, %v3723_v33 }
 0x586   : > { %v1985_v17 = vpack.c.bf16 %v1960_v15, %v1959_v14  ;;  %v3154_v18 = vpop.f32.mrb[96].mxu1 }
 0x587   : > { %v1893_v19 = vadd.f32 %v3154_v18, %v3923_v23  ;;  %v1884_v20 = vpop.f32.mrb[97].mxu1  ;;  %v3959_v14 = vrot.slane %v3884_v28, %v2014_v13 }
 0x588   : > { %v1885_v21 = vadd.f32 %v1884_v20, %v3923_v23  ;;  %v3155_v22 = vpop.f32.mrb[98].mxu1  ;;  %3196 = vmatprep.mubr.bf16.mxu0 %v1985_v17 }
 0x589   : > { %v1896_v24 = vadd.f32 %v3155_v22, %v3923_v23  ;;  %v1887_v25 = vpop.f32.mrb[99].mxu1  ;;  %3197 = vmatmul.mubr.bf16.gmra.mrb[92].mxu0 %v1986_v16  ;;  %v1965_v29 = vmax.f32 %v1893_v19, 0.0 }
 0x58a   : > { %v1888_v34 = vadd.f32 %v1887_v25, %v3923_v23  ;;  %v1963_v36 = vmax.f32 %v1885_v21, 0.0 }
 0x58b   : > { %v1966_v26 = vmax.f32 %v1896_v24, 0.0 }
 0x58c   : > { %v1964_v27 = vmax.f32 %v1888_v34, 0.0 }
 0x58d   : > { %v1988_v31 = vpack.c.bf16 %v1966_v26, %v1965_v29 }
 0x58e   : > { %v1987_v8 = vpack.c.bf16 %v1964_v27, %v1963_v36  ;;  %v3158_v4 = vpop.f32.mrb[100].mxu1 }
 0x58f   : > { %v1909_v30 = vadd.f32 %v3158_v4, %v3923_v23  ;;  %v1900_v32 = vpop.f32.mrb[101].mxu1 }
 0x590   : > { %v1901_v37 = vadd.f32 %v1900_v32, %v3923_v23  ;;  %v3159_v38 = vpop.f32.mrb[102].mxu1  ;;  %3200 = vmatprep.mubr.bf16.mxu0 %v1987_v8 }
 0x591   : > { %v1912_v39 = vadd.f32 %v3159_v38, %v3923_v23  ;;  %v1903_v40 = vpop.f32.mrb[103].mxu1  ;;  %3201 = vmatmul.mubr.bf16.gmra.mrb[96].mxu0 %v1988_v31  ;;  %v1969_v42 = vmax.f32 %v1909_v30, 0.0 }
 0x592   : > { %v1904_v41 = vadd.f32 %v1903_v40, %v3923_v23  ;;  %v1967_v44 = vmax.f32 %v1901_v37, 0.0 }
 0x593   : > { %v1970_v43 = vmax.f32 %v1912_v39, 0.0 }
 0x594   : > { %v1968_v45 = vmax.f32 %v1904_v41, 0.0 }
 0x595   : > { %v1990_v46 = vpack.c.bf16 %v1970_v43, %v1969_v42 }
 0x596   : > { %v1989_v47 = vpack.c.bf16 %v1968_v45, %v1967_v44  ;;  %v3162_v48 = vpop.f32.mrb[104].mxu1 }
 0x597   : > { %v1925_v35 = vadd.f32 %v3162_v48, %v3923_v23  ;;  %v1916_v49 = vpop.f32.mrb[105].mxu1 }
 0x598   : > { %v1917_v50 = vadd.f32 %v1916_v49, %v3923_v23  ;;  %v3163_v51 = vpop.f32.mrb[106].mxu1  ;;  %3204 = vmatprep.mubr.bf16.mxu0 %v1989_v47 }
 0x599   : > { %v1928_v52 = vadd.f32 %v3163_v51, %v3923_v23  ;;  %v1919_v53 = vpop.f32.mrb[107].mxu1  ;;  %3205 = vmatmul.mubr.bf16.gmra.mrb[100].mxu0 %v1990_v46  ;;  %v1973_v55 = vmax.f32 %v1925_v35, 0.0 }
 0x59a   : > { %v1920_v54 = vadd.f32 %v1919_v53, %v3923_v23  ;;  %v1971_v57 = vmax.f32 %v1917_v50, 0.0 }
 0x59b   : > { %v1974_v56 = vmax.f32 %v1928_v52, 0.0 }
 0x59c   : > { %v1972_v58 = vmax.f32 %v1920_v54, 0.0 }
 0x59d   : > { %v1992_v59 = vpack.c.bf16 %v1974_v56, %v1973_v55 }
 0x59e   : > { %v1991_v60 = vpack.c.bf16 %v1972_v58, %v1971_v57  ;;  %v3166_v61 = vpop.f32.mrb[108].mxu1 }
 0x59f   : > { %v1941_v62 = vadd.f32 %v3166_v61, %v3923_v23  ;;  %v1932_v63 = vpop.f32.mrb[109].mxu1 }
 0x5a0   : > { %v1933_v0 = vadd.f32 %v1932_v63, %v3923_v23  ;;  %v3167_v1 = vpop.f32.mrb[110].mxu1  ;;  %3208 = vmatprep.mubr.bf16.mxu0 %v1991_v60 }
 0x5a1   : > { %v1944_v2 = vadd.f32 %v3167_v1, %v3923_v23  ;;  %v1935_v3 = vpop.f32.mrb[111].mxu1  ;;  %3209 = vmatmul.mubr.bf16.gmra.mrb[104].mxu0 %v1992_v59  ;;  %v1977_v6 = vmax.f32 %v1941_v62, 0.0 }
 0x5a2   : > { %v1936_v5 = vadd.f32 %v1935_v3, %v3923_v23  ;;  %v1975_v9 = vmax.f32 %v1933_v0, 0.0 }
 0x5a3   : > { %v1978_v7 = vmax.f32 %v1944_v2, 0.0 }
 0x5a4   : > { %v1976_v10 = vmax.f32 %v1936_v5, 0.0 }
 0x5a5   : > { %v1994_v11 = vpack.c.bf16 %v1978_v7, %v1977_v6 }
 0x5a6   : > { %v1993_v12 = vpack.c.bf16 %v1976_v10, %v1975_v9 }
 0x5a8   : > { %3212 = vmatprep.mubr.bf16.mxu0 %v1993_v12 }
 0x5a9   : > { %3213 = vmatmul.mubr.bf16.gmra.mrb[108].mxu0 %v1994_v11 }
 0x644   : > { %v3186_v15 = vpop.f32.mrb[80].mxu0 }
 0x645   : > { %v3962_v16 = vadd.f32 %v3186_v15, %v3959_v14  ;;  %v2098_v17 = vpop.f32.mrb[81].mxu0 }
 0x646   : > { %v3965_v23 = vadd.f32 %v2098_v17, %v3959_v14  ;;  %v3187_v18 = vpop.f32.mrb[82].mxu0 }
 0x647   : > { %2229 = vmax.xlane.f32.xlu1 %v3962_v16  ;;  %v2101_v19 = vpop.f32.mrb[83].mxu0  ;;  %v3970_v20 = vadd.f32 %v3187_v18, %v3959_v14 }
 0x648   : > { %2225 = vmax.xlane.f32.xlu0 %v3965_v23  ;;  %v3973_v33 = vadd.f32 %v2101_v19, %v3959_v14 }
 0x64b   : > { %2231 = vmax.xlane.f32.xlu1 %v3970_v20 }
 0x64c   : > { %v3190_v28 = vpop.f32.mrb[84].mxu0  ;;  %2227 = vmax.xlane.f32.xlu0 %v3973_v33 }
 0x64d   : > { %v3978_v21 = vadd.f32 %v3190_v28, %v3959_v14  ;;  %v2114_v22 = vpop.f32.mrb[85].mxu0 }
 0x64e   : > { %v3191_v24 = vpop.f32.mrb[86].mxu0  ;;  %v3986_v29 = vadd.f32 %v2114_v22, %v3959_v14 }
 0x64f   : > { %v3981_v25 = vadd.f32 %v3191_v24, %v3959_v14  ;;  %v2117_v34 = vpop.f32.mrb[87].mxu0 }
 0x650   : > { %2237 = vmax.xlane.f32.xlu0 %v3978_v21  ;;  %v3989_v26 = vadd.f32 %v2117_v34, %v3959_v14 }
 0x651   : > { %2239 = vmax.xlane.f32.xlu1 %v3981_v25 }
 0x654   : > { %v3194_v36 = vpop.f32.mrb[88].mxu0  ;;  %2233 = vmax.xlane.f32.xlu0 %v3986_v29 }
 0x655   : > { %v3993_v27 = vadd.f32 %v3194_v36, %v3959_v14  ;;  %v2130_v31 = vpop.f32.mrb[89].mxu0  ;;  %2235 = vmax.xlane.f32.xlu1 %v3989_v26 }
 0x656   : > { %v3195_v8 = vpop.f32.mrb[90].mxu0  ;;  %v4002_v32 = vadd.f32 %v2130_v31, %v3959_v14 }
 0x657   : > { %v3997_v4 = vadd.f32 %v3195_v8, %v3959_v14  ;;  %v2133_v30 = vpop.f32.mrb[91].mxu0 }
 0x658   : > { %2245 = vmax.xlane.f32.xlu0 %v3993_v27  ;;  %v4005_v37 = vadd.f32 %v2133_v30, %v3959_v14 }
 0x659   : > { %2247 = vmax.xlane.f32.xlu1 %v3997_v4 }
 0x65c   : > { %v3198_v38 = vpop.f32.mrb[92].mxu0  ;;  %2241 = vmax.xlane.f32.xlu0 %v4002_v32 }
 0x65d   : > { %v4009_v39 = vadd.f32 %v3198_v38, %v3959_v14  ;;  %v2146_v40 = vpop.f32.mrb[93].mxu0  ;;  %2243 = vmax.xlane.f32.xlu1 %v4005_v37 }
 0x65e   : > { %v3199_v41 = vpop.f32.mrb[94].mxu0  ;;  %v4018_v44 = vadd.f32 %v2146_v40, %v3959_v14 }
 0x65f   : > { %v4013_v42 = vadd.f32 %v3199_v41, %v3959_v14  ;;  %v2149_v43 = vpop.f32.mrb[95].mxu0 }
 0x660   : > { %2253 = vmax.xlane.f32.xlu0 %v4009_v39  ;;  %v4021_v45 = vadd.f32 %v2149_v43, %v3959_v14 }
 0x661   : > { %2255 = vmax.xlane.f32.xlu1 %v4013_v42 }
 0x664   : > { %v3202_v46 = vpop.f32.mrb[96].mxu0  ;;  %2249 = vmax.xlane.f32.xlu0 %v4018_v44 }
 0x665   : > { %v4025_v47 = vadd.f32 %v3202_v46, %v3959_v14  ;;  %v2162_v48 = vpop.f32.mrb[97].mxu0  ;;  %2251 = vmax.xlane.f32.xlu1 %v4021_v45 }
 0x666   : > { %v3203_v35 = vpop.f32.mrb[98].mxu0  ;;  %v4034_v51 = vadd.f32 %v2162_v48, %v3959_v14 }
 0x667   : > { %v4029_v49 = vadd.f32 %v3203_v35, %v3959_v14  ;;  %v2165_v50 = vpop.f32.mrb[99].mxu0 }
 0x668   : > { %2261 = vmax.xlane.f32.xlu0 %v4025_v47  ;;  %v4037_v52 = vadd.f32 %v2165_v50, %v3959_v14 }
 0x669   : > { %2263 = vmax.xlane.f32.xlu1 %v4029_v49 }
 0x66c   : > { %v3206_v53 = vpop.f32.mrb[100].mxu0  ;;  %2257 = vmax.xlane.f32.xlu0 %v4034_v51 }
 0x66d   : > { %v4041_v54 = vadd.f32 %v3206_v53, %v3959_v14  ;;  %v2178_v55 = vpop.f32.mrb[101].mxu0  ;;  %2259 = vmax.xlane.f32.xlu1 %v4037_v52 }
 0x66e   : > { %v3207_v56 = vpop.f32.mrb[102].mxu0  ;;  %v4050_v59 = vadd.f32 %v2178_v55, %v3959_v14 }
 0x66f   : > { %v4045_v57 = vadd.f32 %v3207_v56, %v3959_v14  ;;  %v2181_v58 = vpop.f32.mrb[103].mxu0 }
 0x670   : > { %2269 = vmax.xlane.f32.xlu0 %v4041_v54  ;;  %v4053_v60 = vadd.f32 %v2181_v58, %v3959_v14 }
 0x671   : > { %2271 = vmax.xlane.f32.xlu1 %v4045_v57 }
 0x674   : > { %v3210_v61 = vpop.f32.mrb[104].mxu0  ;;  %2265 = vmax.xlane.f32.xlu0 %v4050_v59 }
 0x675   : > { %v4057_v62 = vadd.f32 %v3210_v61, %v3959_v14  ;;  %v2194_v63 = vpop.f32.mrb[105].mxu0  ;;  %2267 = vmax.xlane.f32.xlu1 %v4053_v60 }
 0x676   : > { %v3211_v0 = vpop.f32.mrb[106].mxu0  ;;  %v4066_v3 = vadd.f32 %v2194_v63, %v3959_v14 }
 0x677   : > { %v4061_v1 = vadd.f32 %v3211_v0, %v3959_v14  ;;  %v2197_v2 = vpop.f32.mrb[107].mxu0 }
 0x678   : > { %2277 = vmax.xlane.f32.xlu0 %v4057_v62  ;;  %v4069_v5 = vadd.f32 %v2197_v2, %v3959_v14 }
 0x679   : > { %2279 = vmax.xlane.f32.xlu1 %v4061_v1 }
 0x67c   : > { %v3214_v6 = vpop.f32.mrb[108].mxu0  ;;  %2273 = vmax.xlane.f32.xlu0 %v4066_v3 }
 0x67d   : > { %v2210_v7 = vpop.f32.mrb[109].mxu0  ;;  %2275 = vmax.xlane.f32.xlu1 %v4069_v5  ;;  %v4084_v15 = vadd.f32 %v3214_v6, %v3959_v14 }
 0x67e   : > { %v4074_v9 = vadd.f32 %v2210_v7, %v3959_v14  ;;  %v3215_v10 = vpop.f32.mrb[110].mxu0 }
 0x67f   : > { %v4077_v11 = vadd.f32 %v3215_v10, %v3959_v14  ;;  %v2213_v12 = vpop.f32.mrb[111].mxu0 }
 0x680   : > { %v4080_v13 = vadd.f32 %v2213_v12, %v3959_v14  ;;  %2281 = vmax.xlane.f32.xlu0 %v4074_v9 }
 0x682   : > { %2283 = vmax.xlane.f32.xlu1 %v4080_v13 }
 0x684   : > { %2285 = vmax.xlane.f32.xlu0 %v4084_v15 }
 0x686   : > { %2287 = vmax.xlane.f32.xlu1 %v4077_v11 }
 0x6d4   : > { %v2230_v17 = vpop.xlane.xlu1 %2229 }
 0x6d5   : > { %v2291_v18 = vsub.f32 %v3962_v16, %v2230_v17  ;;  %v2226_v19 = vpop.xlane.xlu0 %2225 }
 0x6d6   : > { %v2289_v28 = vsub.f32 %v3965_v23, %v2226_v19 }
 0x6d7   : > { %v2325_v22 = vmul.f32 1.442695, %v2291_v18 }
 0x6d8   : > { %v2321_v24 = vmul.f32 1.442695, %v2289_v28  ;;  %v2232_v34 = vpop.xlane.xlu1 %2231 }
 0x6d9   : > { %3340 = vpow2.f32 %v2325_v22  ;;  %v2292_v36 = vsub.f32 %v3970_v20, %v2232_v34  ;;  %v2228_v14 = vpop.xlane.xlu0 %2227 }
 0x6da   : > { %v2290_v31 = vsub.f32 %v3973_v33, %v2228_v14  ;;  %3342 = vpow2.f32 %v2321_v24 }
 0x6db   : > { %v2327_v8 = vmul.f32 1.442695, %v2292_v36 }
 0x6dc   : > { %v2323_v30 = vmul.f32 1.442695, %v2290_v31 }
 0x6dd   : > { %3344 = vpow2.f32 %v2327_v8  ;;  %v2238_v38 = vpop.xlane.xlu0 %2237 }
 0x6de   : > { %v2295_v40 = vsub.f32 %v3978_v21, %v2238_v38  ;;  %v2240_v16 = vpop.xlane.xlu1 %2239  ;;  %3346 = vpow2.f32 %v2323_v30 }
 0x6df   : > { %v2296_v41 = vsub.f32 %v3981_v25, %v2240_v16 }
 0x6e0   : > { %v2333_v23 = vmul.f32 1.442695, %v2295_v40 }
 0x6e1   : > { %v2335_v43 = vmul.f32 1.442695, %v2296_v41  ;;  %v2234_v46 = vpop.xlane.xlu0 %2233 }
 0x6e2   : > { %3348 = vpow2.f32 %v2333_v23  ;;  %v2293_v20 = vsub.f32 %v3986_v29, %v2234_v46  ;;  %v2236_v48 = vpop.xlane.xlu1 %2235 }
 0x6e3   : > { %v4096_v35 = vpop.eup %3340  ;;  %v2294_v33 = vsub.f32 %v3989_v26, %v2236_v48  ;;  %3350 = vpow2.f32 %v2335_v43 }
 0x6e4   : > { %v2329_v50 = vmul.f32 1.442695, %v2293_v20  ;;  %2389 = vadd.xlane.f32.xlu0 %v4096_v35  ;;  %v4100_v55 = vpop.eup %3342 }
 0x6e5   : > { %v2331_v21 = vmul.f32 1.442695, %v2294_v33  ;;  %v2246_v53 = vpop.xlane.xlu0 %2245 }
 0x6e6   : > { %3352 = vpow2.f32 %v2329_v50  ;;  %v2299_v25 = vsub.f32 %v3993_v27, %v2246_v53  ;;  %v2248_v56 = vpop.xlane.xlu1 %2247 }
 0x6e7   : > { %v4103_v58 = vpop.eup %3344  ;;  %v2300_v29 = vsub.f32 %v3997_v4, %v2248_v56  ;;  %3354 = vpow2.f32 %v2331_v21 }
 0x6e8   : > { %v2341_v61 = vmul.f32 1.442695, %v2299_v25  ;;  %2391 = vadd.xlane.f32.xlu1 %v4103_v58  ;;  %2385 = vadd.xlane.f32.xlu0 %v4100_v55  ;;  %v4109_v6 = vpop.eup %3346 }
 0x6e9   : > { %v2343_v26 = vmul.f32 1.442695, %v2300_v29  ;;  %v2242_v63 = vpop.xlane.xlu0 %2241 }
 0x6ea   : > { %3356 = vpow2.f32 %v2341_v61  ;;  %v2297_v0 = vsub.f32 %v4002_v32, %v2242_v63  ;;  %v2244_v2 = vpop.xlane.xlu1 %2243 }
 0x6eb   : > { %v2298_v27 = vsub.f32 %v4005_v37, %v2244_v2  ;;  %3358 = vpow2.f32 %v2343_v26 }
 0x6ec   : > { %v4112_v7 = vpop.eup %3348  ;;  %v2337_v10 = vmul.f32 1.442695, %v2297_v0  ;;  %2387 = vadd.xlane.f32.xlu1 %v4109_v6 }
 0x6ed   : > { %v2339_v4 = vmul.f32 1.442695, %v2298_v27  ;;  %2397 = vadd.xlane.f32.xlu0 %v4112_v7  ;;  %v2254_v12 = vpop.xlane.xlu0 %2253  ;;  %v4117_v32 = vpop.eup %3350 }
 0x6ee   : > { %3360 = vpow2.f32 %v2337_v10  ;;  %v2303_v17 = vsub.f32 %v4009_v39, %v2254_v12  ;;  %v2256_v18 = vpop.xlane.xlu1 %2255 }
 0x6ef   : > { %v2304_v19 = vsub.f32 %v4013_v42, %v2256_v18  ;;  %3362 = vpow2.f32 %v2339_v4 }
 0x6f0   : > { %v4120_v28 = vpop.eup %3352  ;;  %v2349_v37 = vmul.f32 1.442695, %v2303_v17  ;;  %2399 = vadd.xlane.f32.xlu1 %v4117_v32 }
 0x6f1   : > { %v2351_v22 = vmul.f32 1.442695, %v2304_v19  ;;  %2393 = vadd.xlane.f32.xlu0 %v4120_v28  ;;  %v2250_v24 = vpop.xlane.xlu0 %2249  ;;  %v4125_v39 = vpop.eup %3354 }
 0x6f2   : > { %3364 = vpow2.f32 %v2349_v37  ;;  %v2301_v34 = vsub.f32 %v4018_v44, %v2250_v24  ;;  %v2252_v36 = vpop.xlane.xlu1 %2251 }
 0x6f3   : > { %v2302_v14 = vsub.f32 %v4021_v45, %v2252_v36  ;;  %3366 = vpow2.f32 %v2351_v22 }
 0x6f4   : > { %v4128_v31 = vpop.eup %3356  ;;  %v2345_v42 = vmul.f32 1.442695, %v2301_v34  ;;  %2395 = vadd.xlane.f32.xlu1 %v4125_v39 }
 0x6f5   : > { %v2347_v8 = vmul.f32 1.442695, %v2302_v14  ;;  %2405 = vadd.xlane.f32.xlu0 %v4128_v31  ;;  %v2262_v30 = vpop.xlane.xlu0 %2261  ;;  %v4133_v44 = vpop.eup %3358 }
 0x6f6   : > { %3368 = vpow2.f32 %v2345_v42  ;;  %v2307_v38 = vsub.f32 %v4025_v47, %v2262_v30  ;;  %v2264_v40 = vpop.xlane.xlu1 %2263 }
 0x6f7   : > { %v2308_v16 = vsub.f32 %v4029_v49, %v2264_v40  ;;  %3370 = vpow2.f32 %v2347_v8 }
 0x6f8   : > { %v4136_v41 = vpop.eup %3360  ;;  %v2357_v45 = vmul.f32 1.442695, %v2307_v38  ;;  %2407 = vadd.xlane.f32.xlu1 %v4133_v44 }
 0x6f9   : > { %v2359_v23 = vmul.f32 1.442695, %v2308_v16  ;;  %2401 = vadd.xlane.f32.xlu0 %v4136_v41  ;;  %v2258_v43 = vpop.xlane.xlu0 %2257  ;;  %v4141_v47 = vpop.eup %3362 }
 0x6fa   : > { %3372 = vpow2.f32 %v2357_v45  ;;  %v2305_v46 = vsub.f32 %v4034_v51, %v2258_v43  ;;  %v2260_v20 = vpop.xlane.xlu1 %2259 }
 0x6fb   : > { %v2306_v48 = vsub.f32 %v4037_v52, %v2260_v20  ;;  %3374 = vpow2.f32 %v2359_v23 }
 0x6fc   : > { %v4144_v33 = vpop.eup %3364  ;;  %v2353_v49 = vmul.f32 1.442695, %v2305_v46  ;;  %2403 = vadd.xlane.f32.xlu1 %v4141_v47 }
 0x6fd   : > { %v2355_v50 = vmul.f32 1.442695, %v2306_v48  ;;  %2413 = vadd.xlane.f32.xlu0 %v4144_v33  ;;  %v2270_v21 = vpop.xlane.xlu0 %2269  ;;  %v4149_v51 = vpop.eup %3366 }
 0x6fe   : > { %3376 = vpow2.f32 %v2353_v49  ;;  %v2311_v53 = vsub.f32 %v4041_v54, %v2270_v21  ;;  %v2272_v25 = vpop.xlane.xlu1 %2271 }
 0x6ff   : > { %v2312_v56 = vsub.f32 %v4045_v57, %v2272_v25  ;;  %3378 = vpow2.f32 %v2355_v50 }
 0x700   : > { %v4152_v29 = vpop.eup %3368  ;;  %v2365_v52 = vmul.f32 1.442695, %v2311_v53  ;;  %2415 = vadd.xlane.f32.xlu1 %v4149_v51 }
 0x701   : > { %v2367_v61 = vmul.f32 1.442695, %v2312_v56  ;;  %2409 = vadd.xlane.f32.xlu0 %v4152_v29  ;;  %v2266_v26 = vpop.xlane.xlu0 %2265  ;;  %v4157_v54 = vpop.eup %3370 }
 0x702   : > { %3380 = vpow2.f32 %v2365_v52  ;;  %v2309_v63 = vsub.f32 %v4050_v59, %v2266_v26  ;;  %v2268_v0 = vpop.xlane.xlu1 %2267 }
 0x703   : > { %v2310_v2 = vsub.f32 %v4053_v60, %v2268_v0  ;;  %3382 = vpow2.f32 %v2367_v61 }
 0x704   : > { %v4160_v27 = vpop.eup %3372  ;;  %v2361_v57 = vmul.f32 1.442695, %v2309_v63  ;;  %2411 = vadd.xlane.f32.xlu1 %v4157_v54 }
 0x705   : > { %v2363_v10 = vmul.f32 1.442695, %v2310_v2  ;;  %2421 = vadd.xlane.f32.xlu0 %v4160_v27  ;;  %v2278_v4 = vpop.xlane.xlu0 %2277  ;;  %v4165_v59 = vpop.eup %3374 }
 0x706   : > { %3384 = vpow2.f32 %v2361_v57  ;;  %v2315_v12 = vsub.f32 %v4057_v62, %v2278_v4  ;;  %v2280_v17 = vpop.xlane.xlu1 %2279 }
 0x707   : > { %v2316_v18 = vsub.f32 %v4061_v1, %v2280_v17  ;;  %3386 = vpow2.f32 %v2363_v10 }
 0x708   : > { %v4168_v19 = vpop.eup %3376  ;;  %v2373_v60 = vmul.f32 1.442695, %v2315_v12  ;;  %2423 = vadd.xlane.f32.xlu1 %v4165_v59 }
 0x709   : > { %v2375_v37 = vmul.f32 1.442695, %v2316_v18  ;;  %2417 = vadd.xlane.f32.xlu0 %v4168_v19  ;;  %v2274_v22 = vpop.xlane.xlu0 %2273  ;;  %v4173_v62 = vpop.eup %3378 }
 0x70a   : > { %3388 = vpow2.f32 %v2373_v60  ;;  %v2313_v24 = vsub.f32 %v4066_v3, %v2274_v22  ;;  %v2276_v34 = vpop.xlane.xlu1 %2275 }
 0x70b   : > { %v2314_v36 = vsub.f32 %v4069_v5, %v2276_v34  ;;  %3390 = vpow2.f32 %v2375_v37 }
 0x70c   : > { %v4176_v14 = vpop.eup %3380  ;;  %v2369_v1 = vmul.f32 1.442695, %v2313_v24  ;;  %2419 = vadd.xlane.f32.xlu1 %v4173_v62 }
 0x70d   : > { %v2371_v42 = vmul.f32 1.442695, %v2314_v36  ;;  %2429 = vadd.xlane.f32.xlu0 %v4176_v14  ;;  %v2282_v8 = vpop.xlane.xlu0 %2281  ;;  %v4181_v38 = vpop.eup %3382 }
 0x70e   : > { %3392 = vpow2.f32 %v2369_v1  ;;  %v2317_v30 = vsub.f32 %v4074_v9, %v2282_v8 }
 0x70f   : > { %v2284_v3 = vpop.xlane.xlu1 %2283  ;;  %3394 = vpow2.f32 %v2371_v42 }
 0x710   : > { %v4183_v40 = vpop.eup %3384  ;;  %v2377_v16 = vmul.f32 1.442695, %v2317_v30  ;;  %v2318_v5 = vsub.f32 %v4080_v13, %v2284_v3  ;;  %2431 = vadd.xlane.f32.xlu1 %v4181_v38 }
 0x711   : > { %2425 = vadd.xlane.f32.xlu0 %v4183_v40  ;;  %v2286_v45 = vpop.xlane.xlu0 %2285  ;;  %v4189_v46 = vpop.eup %3386 }
 0x712   : > { %3396 = vpow2.f32 %v2377_v16  ;;  %v2379_v23 = vmul.f32 1.442695, %v2318_v5  ;;  %v2319_v43 = vsub.f32 %v4084_v15, %v2286_v45 }
 0x713   : > { %v2288_v9 = vpop.xlane.xlu1 %2287 }
 0x714   : > { %v4191_v20 = vpop.eup %3388  ;;  %3398 = vpow2.f32 %v2379_v23  ;;  %v2381_v48 = vmul.f32 1.442695, %v2319_v43  ;;  %v2320_v49 = vsub.f32 %v4077_v11, %v2288_v9  ;;  %2427 = vadd.xlane.f32.xlu1 %v4189_v46 }
 0x715   : > { %2437 = vadd.xlane.f32.xlu0 %v4191_v20  ;;  %v4196_v50 = vpop.eup %3390 }
 0x716   : > { %3400 = vpow2.f32 %v2381_v48  ;;  %v2383_v13 = vmul.f32 1.442695, %v2320_v49 }
 0x718   : > { %v4198_v21 = vpop.eup %3392  ;;  %3402 = vpow2.f32 %v2383_v13  ;;  %2439 = vadd.xlane.f32.xlu1 %v4196_v50 }
 0x719   : > { %2433 = vadd.xlane.f32.xlu0 %v4198_v21  ;;  %v4202_v15 = vpop.eup %3394 }
 0x71c   : > { %v4204_v53 = vpop.eup %3396  ;;  %2435 = vadd.xlane.f32.xlu1 %v4202_v15 }
 0x71d   : > { %2441 = vadd.xlane.f32.xlu0 %v4204_v53 }
 0x71e   : > { %v4208_v11 = vpop.eup %3398 }
 0x720   : > { %v4210_v25 = vpop.eup %3400  ;;  %2443 = vadd.xlane.f32.xlu1 %v4208_v11 }
 0x721   : > { %2445 = vadd.xlane.f32.xlu0 %v4210_v25 }
 0x722   : > { %v4214_v56 = vpop.eup %3402 }
 0x724   : > { %2447 = vadd.xlane.f32.xlu1 %v4214_v56 }
 0x771   : > { %v2390_v52 = vpop.xlane.xlu0 %2389 }
 0x772   : > { %3404 = vrcp.f32 %v2390_v52 }
 0x775   : > { %v2392_v61 = vpop.xlane.xlu1 %2391  ;;  %v2386_v26 = vpop.xlane.xlu0 %2385 }
 0x776   : > { %3406 = vrcp.f32 %v2392_v61 }
 0x777   : > { %3408 = vrcp.f32 %v2386_v26 }
 0x779   : > { %v2388_v63 = vpop.xlane.xlu1 %2387 }
 0x77a   : > { %3410 = vrcp.f32 %v2388_v63  ;;  %v2398_v0 = vpop.xlane.xlu0 %2397 }
 0x77b   : > { %3412 = vrcp.f32 %v2398_v0 }
 0x77c   : > { %v3405_v2 = vpop.eup %3404 }
 0x77d   : > { %v2483_v57 = vmul.f32 %v3405_v2, %v4096_v35  ;;  %v2400_v10 = vpop.xlane.xlu1 %2399 }
 0x77e   : > { %3414 = vrcp.f32 %v2400_v10  ;;  %v2394_v4 = vpop.xlane.xlu0 %2393 }
 0x77f   : > { %2515 = vst [vmem:[%s4221_s20 + $0x10] sm:$0xff] %v2483_v57  ;;  %3416 = vrcp.f32 %v2394_v4 }
 0x780   : > { %v3407_v12 = vpop.eup %3406 }
 0x781   : > { %v3409_v17 = vpop.eup %3408  ;;  %v2484_v18 = vmul.f32 %v3407_v12, %v4103_v58  ;;  %v2396_v60 = vpop.xlane.xlu1 %2395 }
 0x782   : > { %v2481_v37 = vmul.f32 %v3409_v17, %v4100_v55  ;;  %3418 = vrcp.f32 %v2396_v60  ;;  %v2406_v35 = vpop.xlane.xlu0 %2405 }
 0x783   : > { %2516 = vst [vmem:[%s4221_s20 + $0x18] sm:$0xff] %v2484_v18  ;;  %3420 = vrcp.f32 %v2406_v35 }
 0x784   : > { %v3411_v22 = vpop.eup %3410  ;;  %2513 = vst [vmem:[%s4221_s20] sm:$0xff] %v2481_v37 }
 0x785   : > { %v3413_v24 = vpop.eup %3412  ;;  %v2482_v34 = vmul.f32 %v3411_v22, %v4109_v6  ;;  %v2408_v36 = vpop.xlane.xlu1 %2407 }
 0x786   : > { %v2487_v1 = vmul.f32 %v3413_v24, %v4112_v7  ;;  %3422 = vrcp.f32 %v2408_v36  ;;  %v2402_v58 = vpop.xlane.xlu0 %2401 }
 0x787   : > { %2514 = vst [vmem:[%s4221_s20 + $0x8] sm:$0xff] %v2482_v34  ;;  %3424 = vrcp.f32 %v2402_v58 }
 0x788   : > { %v3415_v55 = vpop.eup %3414  ;;  %2519 = vst [vmem:[%s4221_s20 + $0x30] sm:$0xff] %v2487_v1 }
 0x789   : > { %v3417_v42 = vpop.eup %3416  ;;  %v2488_v8 = vmul.f32 %v3415_v55, %v4117_v32  ;;  %v2404_v30 = vpop.xlane.xlu1 %2403 }
 0x78a   : > { %v2485_v3 = vmul.f32 %v3417_v42, %v4120_v28  ;;  %3426 = vrcp.f32 %v2404_v30  ;;  %v2414_v6 = vpop.xlane.xlu0 %2413 }
 0x78b   : > { %2520 = vst [vmem:[%s4221_s20 + $0x38] sm:$0xff] %v2488_v8  ;;  %3428 = vrcp.f32 %v2414_v6 }
 0x78c   : > { %v3419_v7 = vpop.eup %3418  ;;  %2517 = vst [vmem:[%s4221_s20 + $0x20] sm:$0xff] %v2485_v3 }
 0x78d   : > { %v3421_v16 = vpop.eup %3420  ;;  %v2486_v5 = vmul.f32 %v3419_v7, %v4125_v39  ;;  %v2416_v45 = vpop.xlane.xlu1 %2415 }
 0x78e   : > { %v2491_v23 = vmul.f32 %v3421_v16, %v4128_v31  ;;  %3430 = vrcp.f32 %v2416_v45  ;;  %v2410_v32 = vpop.xlane.xlu0 %2409 }
 0x78f   : > { %2518 = vst [vmem:[%s4221_s20 + $0x28] sm:$0xff] %v2486_v5  ;;  %3432 = vrcp.f32 %v2410_v32 }
 0x790   : > { %v3423_v28 = vpop.eup %3422  ;;  %2523 = vst [vmem:[%s4221_s20 + $0x50] sm:$0xff] %v2491_v23 }
 0x791   : > { %v3425_v43 = vpop.eup %3424  ;;  %v2492_v9 = vmul.f32 %v3423_v28, %v4133_v44  ;;  %v2412_v48 = vpop.xlane.xlu1 %2411 }
 0x792   : > { %v2489_v49 = vmul.f32 %v3425_v43, %v4136_v41  ;;  %3434 = vrcp.f32 %v2412_v48  ;;  %v2422_v39 = vpop.xlane.xlu0 %2421 }
 0x793   : > { %2524 = vst [vmem:[%s4221_s20 + $0x58] sm:$0xff] %v2492_v9  ;;  %3436 = vrcp.f32 %v2422_v39 }
 0x794   : > { %v3427_v31 = vpop.eup %3426  ;;  %2521 = vst [vmem:[%s4221_s20 + $0x40] sm:$0xff] %v2489_v49 }
 0x795   : > { %v3429_v13 = vpop.eup %3428  ;;  %v2490_v52 = vmul.f32 %v3427_v31, %v4141_v47  ;;  %v2424_v61 = vpop.xlane.xlu1 %2423 }
 0x796   : > { %v2495_v26 = vmul.f32 %v3429_v13, %v4144_v33  ;;  %3438 = vrcp.f32 %v2424_v61  ;;  %v2418_v44 = vpop.xlane.xlu0 %2417 }
 0x797   : > { %2522 = vst [vmem:[%s4221_s20 + $0x48] sm:$0xff] %v2490_v52  ;;  %3440 = vrcp.f32 %v2418_v44 }
 0x798   : > { %v3431_v41 = vpop.eup %3430  ;;  %2527 = vst [vmem:[%s4221_s20 + $0x70] sm:$0xff] %v2495_v26 }
 0x799   : > { %v3433_v63 = vpop.eup %3432  ;;  %v2496_v0 = vmul.f32 %v3431_v41, %v4149_v51  ;;  %v2420_v2 = vpop.xlane.xlu1 %2419 }
 0x79a   : > { %v2493_v57 = vmul.f32 %v3433_v63, %v4152_v29  ;;  %3442 = vrcp.f32 %v2420_v2  ;;  %v2430_v47 = vpop.xlane.xlu0 %2429 }
 0x79b   : > { %2528 = vst [vmem:[%s4221_s20 + $0x78] sm:$0xff] %v2496_v0  ;;  %3444 = vrcp.f32 %v2430_v47 }
 0x79c   : > { %v3435_v33 = vpop.eup %3434  ;;  %2525 = vst [vmem:[%s4221_s20 + $0x60] sm:$0xff] %v2493_v57 }
 0x79d   : > { %v3437_v10 = vpop.eup %3436  ;;  %v2494_v4 = vmul.f32 %v3435_v33, %v4157_v54  ;;  %v2432_v12 = vpop.xlane.xlu1 %2431 }
 0x79e   : > { %v2499_v17 = vmul.f32 %v3437_v10, %v4160_v27  ;;  %3446 = vrcp.f32 %v2432_v12  ;;  %v2426_v51 = vpop.xlane.xlu0 %2425 }
 0x79f   : > { %2526 = vst [vmem:[%s4221_s20 + $0x68] sm:$0xff] %v2494_v4  ;;  %3448 = vrcp.f32 %v2426_v51 }
 0x7a0   : > { %v3439_v29 = vpop.eup %3438  ;;  %2531 = vst [vmem:[%s4221_s20 + $0x90] sm:$0xff] %v2499_v17 }
 0x7a1   : > { %v3441_v18 = vpop.eup %3440  ;;  %v2500_v60 = vmul.f32 %v3439_v29, %v4165_v59  ;;  %v2428_v37 = vpop.xlane.xlu1 %2427 }
 0x7a2   : > { %v2497_v35 = vmul.f32 %v3441_v18, %v4168_v19  ;;  %3450 = vrcp.f32 %v2428_v37  ;;  %v2438_v54 = vpop.xlane.xlu0 %2437 }
 0x7a3   : > { %2532 = vst [vmem:[%s4221_s20 + $0x98] sm:$0xff] %v2500_v60  ;;  %3452 = vrcp.f32 %v2438_v54 }
 0x7a4   : > { %v3443_v27 = vpop.eup %3442  ;;  %2529 = vst [vmem:[%s4221_s20 + $0x80] sm:$0xff] %v2497_v35 }
 0x7a5   : > { %v3445_v22 = vpop.eup %3444  ;;  %v2498_v24 = vmul.f32 %v3443_v27, %v4173_v62  ;;  %v2440_v34 = vpop.xlane.xlu1 %2439 }
 0x7a6   : > { %v2503_v36 = vmul.f32 %v3445_v22, %v4176_v14  ;;  %3454 = vrcp.f32 %v2440_v34  ;;  %v2434_v59 = vpop.xlane.xlu0 %2433 }
 0x7a7   : > { %2530 = vst [vmem:[%s4221_s20 + $0x88] sm:$0xff] %v2498_v24  ;;  %3456 = vrcp.f32 %v2434_v59 }
 0x7a8   : > { %v3447_v19 = vpop.eup %3446  ;;  %2535 = vst [vmem:[%s4221_s20 + $0xb0] sm:$0xff] %v2503_v36 }
 0x7a9   : > { %v3449_v1 = vpop.eup %3448  ;;  %v2504_v58 = vmul.f32 %v3447_v19, %v4181_v38  ;;  %v2436_v55 = vpop.xlane.xlu1 %2435 }
 0x7aa   : > { %v2501_v42 = vmul.f32 %v3449_v1, %v4183_v40  ;;  %3458 = vrcp.f32 %v2436_v55  ;;  %v2442_v62 = vpop.xlane.xlu0 %2441 }
 0x7ab   : > { %2536 = vst [vmem:[%s4221_s20 + $0xb8] sm:$0xff] %v2504_v58  ;;  %3460 = vrcp.f32 %v2442_v62 }
 0x7ac   : > { %v3451_v14 = vpop.eup %3450  ;;  %2533 = vst [vmem:[%s4221_s20 + $0xa0] sm:$0xff] %v2501_v42 }
 0x7ad   : > { %v3453_v8 = vpop.eup %3452  ;;  %v2502_v30 = vmul.f32 %v3451_v14, %v4189_v46  ;;  %v2444_v3 = vpop.xlane.xlu1 %2443 }
 0x7ae   : > { %v2507_v6 = vmul.f32 %v3453_v8, %v4191_v20  ;;  %3462 = vrcp.f32 %v2444_v3  ;;  %v2446_v38 = vpop.xlane.xlu0 %2445 }
 0x7af   : > { %2534 = vst [vmem:[%s4221_s20 + $0xa8] sm:$0xff] %v2502_v30  ;;  %3464 = vrcp.f32 %v2446_v38 }
 0x7b0   : > { %v3455_v40 = vpop.eup %3454  ;;  %2539 = vst [vmem:[%s4221_s20 + $0xd0] sm:$0xff] %v2507_v6 }
 0x7b1   : > { %v3457_v7 = vpop.eup %3456  ;;  %v2508_v16 = vmul.f32 %v3455_v40, %v4196_v50  ;;  %v2448_v5 = vpop.xlane.xlu1 %2447 }
 0x7b2   : > { %v2505_v46 = vmul.f32 %v3457_v7, %v4198_v21  ;;  %3466 = vrcp.f32 %v2448_v5 }
 0x7b3   : > { %2540 = vst [vmem:[%s4221_s20 + $0xd8] sm:$0xff] %v2508_v16 }
 0x7b4   : > { %v3459_v20 = vpop.eup %3458  ;;  %2537 = vst [vmem:[%s4221_s20 + $0xc0] sm:$0xff] %v2505_v46 }
 0x7b5   : > { %v3461_v45 = vpop.eup %3460  ;;  %v2506_v23 = vmul.f32 %v3459_v20, %v4202_v15 }
 0x7b6   : > { %v2509_v32 = vmul.f32 %v3461_v45, %v4204_v53 }
 0x7b7   : > { %2538 = vst [vmem:[%s4221_s20 + $0xc8] sm:$0xff] %v2506_v23 }
 0x7b8   : > { %v3463_v28 = vpop.eup %3462  ;;  %2541 = vst [vmem:[%s4221_s20 + $0xe0] sm:$0xff] %v2509_v32 }
 0x7b9   : > { %v3465_v50 = vpop.eup %3464  ;;  %v2510_v21 = vmul.f32 %v3463_v28, %v4208_v11 }
 0x7ba   : > { %v2511_v43 = vmul.f32 %v3465_v50, %v4210_v25 }
 0x7bb   : > { %2542 = vst [vmem:[%s4221_s20 + $0xe8] sm:$0xff] %v2510_v21 }
 0x7bc   : > { %v3467_v9 = vpop.eup %3466  ;;  %2543 = vst [vmem:[%s4221_s20 + $0xf0] sm:$0xff] %v2511_v43 }
 0x7bd   : > { %v2512_v15 = vmul.f32 %v3467_v9, %v4214_v56 }
 0x7bf   : > { %2544 = vst [vmem:[%s4221_s20 + $0xf8] sm:$0xff] %v2512_v15 }
 0x7c0   : > { %3510 = shalt.err (!%p3507_p7)
}
 0x7c1   : > { %s3511_s8 = scalar_lea.hbm %s4289_s30, 4096  ;;  %s3515_s11 = scalar_lea.hbm %s4342_s4, 8192 }
 0x7c2   : > { %p3512_p8 = scmp.ne.s32.totalorder %s4289_s30, %s3511_s8  ;;  %p3516_p1 = scmp.lt.u32.totalorder %s4289_s30, %s4342_s4 }
 0x7c3   : > { %p3517_p0 = scmp.lt.u32.totalorder %s3515_s11, %s3511_s8  ;;  %p3519_p6 = scmp.lt.u32.totalorder %s3511_s8, %s4289_s30 }
 0x7c4   : > { %p3513_p11 = pnand %p3512_p8, %p4353_p9 }
 0x7c5   : > { %p3518_p5 = por %p3517_p0, %p3516_p1 }
 0x7c6   : > { %p3514_p13 = pneg %p3513_p11 }
 0x7c7   : > { %p3520_p10 = por %p3519_p6, %p3518_p5 }
 0x7c9   : > { %p3521_p12 = pnand %p3520_p10, %p3514_p13 }
 0x7cb   : > { %3524 = shalt.err (!%p3521_p12)
}
 0x7cc   : > { %s3569_s14 = smov 128   ;;  %s3570_s20 = smov 8  }
 0x7cd   : > { %3224 = dma.vmem_to_hbm [thread:$0]  (%p4353_p9), %s4291_s23, 4096, %s4289_s30, %s4297_s19, %s3569_s14, %s3569_s14, %s3570_s20  }
 0x7ce PF: > { %p3236_p2 = scmp.ge.s32.totalorder %s3563_s18, 2  ;;  %s2574_s22 = sand.u32 1, %s3551_s15  }
 0x7cf   : > { %p4354_p3 = scmp.ne.s32.totalorder %s4347_s26, 0  ;;  %s2575_s28 = scalar_lea.sflag [#allocation4], %s2574_s22 }
 0x7d1   : > { %p3231_p4 = pnand %p3236_p2, %p4354_p3 }
 0x7d3   : > { %3546 = dma.done.wait (!%p3231_p4), %s2575_s28, 4096  }
 0x7d4   : > { %3548 = vsyncadd (!%p3231_p4), %s2575_s28, 4294963200  ;;  %p15_p7 = scmp.ge.s32.totalorder %s3621_s21, 4   ;;  %s4355_s15 = smov %s3555_s16 }
 0x7d5   : > { %s4356_s16 = smov %s3559_s17  ;;  %s4357_s17 = smov %s3632_s24 }
 0x7d6   : > { %s4358_s18 = smov %s3621_s21  ;;  %17 = sbr.rel (!%p15_p7) target bundleno = 4 (0x4), region = 81 }
 0x7dd   :  { %2580 = vsyncpa [#allocation3], 1 }
 0x7de   :  { %2582 = vsyncpa [#allocation3 + $0x1], 1 }
 0x7df   :  { %2583 = vsyncpa [#allocation4], 1 }
 0x7e0   :  { %2585 = vsyncpa [#allocation4 + $0x1], 1 }

</bundles_post_ra>
